<compile_context>
chip_gen: v7x
topology: tpu7x:2x2x1
jax: 0.10.0
libtpu: 0.0.40
codegen_flags: <defaults>
</compile_context>

<pallas_src>
from functools import partial

import jax
import jax.numpy as jnp
from jax.experimental import pallas as pl
from jax.experimental.pallas import tpu as pltpu

COMPUTE_DTYPE = jnp.bfloat16   # MXU input dtype (f32 accumulation everywhere)

_BUFFERED_WEIGHTS_OK = None    # set by _buffered_weight_mode() (probed outside jit)


# --------------------------------------------------------------------------- #
# Helpers
# --------------------------------------------------------------------------- #
def _layernorm(x, g, b, eps=1e-5):
    """LayerNorm in float32 (mirrors CLIP's fp16-safe LayerNorm subclass)."""
    xf = x.astype(jnp.float32)
    mu = jnp.mean(xf, axis=-1, keepdims=True)
    var = jnp.mean(jnp.square(xf - mu), axis=-1, keepdims=True)
    return (xf - mu) * jax.lax.rsqrt(var + eps) * g.astype(jnp.float32) + b.astype(jnp.float32)


def _buffered_weight_mode():
    """Probe (once, outside jit) whether pl.Buffered(1) on a grid-invariant BlockSpec is
    accepted by this JAX/Mosaic build. Single-buffering grid-invariant weights halves
    their resident VMEM (matters on v7x's 64 MiB part / v5e's 16 MiB scoped default)."""
    global _BUFFERED_WEIGHTS_OK
    if _BUFFERED_WEIGHTS_OK is not None:
        return _BUFFERED_WEIGHTS_OK
    try:
        def _probe_kernel(x_ref, w_ref, o_ref):
            o_ref[...] = x_ref[...] + w_ref[...]

        w_spec = pl.BlockSpec((8, 128), lambda i: (0, 0), pipeline_mode=pl.Buffered(1))
        out = pl.pallas_call(
            _probe_kernel,
            out_shape=jax.ShapeDtypeStruct((16, 128), jnp.float32),
            grid=(2,),
            in_specs=[pl.BlockSpec((8, 128), lambda i: (i, 0)), w_spec],
            out_specs=pl.BlockSpec((8, 128), lambda i: (i, 0)),
        )(jnp.zeros((16, 128), jnp.float32), jnp.ones((8, 128), jnp.float32))
        jax.block_until_ready(out)
        _BUFFERED_WEIGHTS_OK = True
    except Exception:
        _BUFFERED_WEIGHTS_OK = False
    return _BUFFERED_WEIGHTS_OK


def _const_spec(a):
    """BlockSpec for a grid-invariant (weight) operand: full-array block, constant
    index_map, single pipeline buffer when supported."""
    nd = a.ndim
    idx = lambda i, _nd=nd: (0,) * _nd
    if _BUFFERED_WEIGHTS_OK:
        return pl.BlockSpec(a.shape, idx, pipeline_mode=pl.Buffered(1))
    return pl.BlockSpec(a.shape, idx)


def _pick_tb(n, seq_len, target_rows=256):
    """Batch elements per grid step. Aim rows = tb*L near target_rows (use 128 on v5e,
    256 on v6e/v7x) for MXU utilization, keep >= 2 grid steps so the DMA pipeline and
    the second TensorCore (v7x megacore) have work, and keep rows 8-aligned (Mosaic
    second-minor constraint) unless the block covers the full array."""
    best = 1
    for tb in range(1, n + 1):
        if n % tb:
            continue
        rows = tb * seq_len
        if rows > target_rows and tb > 1:
            continue
        if n > 1 and n // tb < 2:
            continue                          # keep the grid >= 2 steps
        if rows % 8 != 0 and rows != n * seq_len:
            continue                          # invalid block shape for Mosaic
        best = tb
    rows = best * seq_len
    if rows % 8 != 0 and rows != n * seq_len:
        best = n                              # fall back to one full-array block
    return best


# --------------------------------------------------------------------------- #
# Residual attention block kernel
# --------------------------------------------------------------------------- #
def block_kernel(x_ref,
                 ln1_g_ref, ln1_b_ref,
                 wqkv_ref, bqkv_ref,
                 wo_ref, bo_ref,
                 ln2_g_ref, ln2_b_ref,
                 wfc_ref, bfc_ref,
                 wproj_ref, bproj_ref,
                 o_ref,
                 *, n_head, tb, seq_len, causal):
    rows, D = x_ref.shape                 # rows == tb * seq_len
    dh = D // n_head
    cdt = wqkv_ref.dtype                  # bf16 compute dtype at the MXU boundary

    x = x_ref[...].astype(jnp.float32)    # (rows, D) running activations, f32

    # ---------------- attention branch: x + W_o . MHA(LN1(x)) ----------------
    xn = _layernorm(x, ln1_g_ref[0], ln1_b_ref[0])
    # Single fused QKV matmul (bf16 in, f32 accumulate). 1/sqrt(dh) is already folded
    # into the Q columns of wqkv / bqkv at weight-prep time.
    qkv = jnp.dot(xn.astype(cdt), wqkv_ref[...],
                  preferred_element_type=jnp.float32) + bqkv_ref[0]          # (rows, 3D) f32
    qkv = qkv.astype(cdt)                                                    # one cast, no scratch stores

    q3 = qkv[:, :D].reshape(tb, seq_len, D)         # (tb, L, D) bf16, scale pre-folded
    k3 = qkv[:, D:2 * D].reshape(tb, seq_len, D)
    v3 = qkv[:, 2 * D:].reshape(tb, seq_len, D)

    if causal:
        row_ids = jax.lax.broadcasted_iota(jnp.int32, (seq_len, seq_len), 0)
        col_ids = jax.lax.broadcasted_iota(jnp.int32, (seq_len, seq_len), 1)
        mask_bias = jnp.where(col_ids > row_ids, jnp.float32(-1e9), jnp.float32(0.0))

    # Loop over heads only (n_head bodies), each head batched over tb via einsum.
    # TODO(synk): for real CLIP sizes, do one head-major relayout (pltpu.einshape) and a
    # single batched dot over tb*n_head instead of the per-head lane slices below.
    head_outs = []
    for h in range(n_head):
        cs = slice(h * dh, (h + 1) * dh)
        s = jnp.einsum('bqd,bkd->bqk', q3[:, :, cs], k3[:, :, cs],
                       preferred_element_type=jnp.float32)                  # (tb, L, L) f32
        if causal:
            s = s + mask_bias
        s = s - jnp.max(s, axis=-1, keepdims=True)
        p = jnp.exp(s)
        p = p * pl.reciprocal(jnp.sum(p, axis=-1, keepdims=True), approx=True)
        head_outs.append(jnp.einsum('bqk,bkd->bqd', p.astype(cdt), v3[:, :, cs],
                                    preferred_element_type=jnp.float32))    # (tb, L, dh) f32
    attn = jnp.concatenate(head_outs, axis=-1).reshape(rows, D)             # (rows, D) f32

    attn = jnp.dot(attn.astype(cdt), wo_ref[...],
                   preferred_element_type=jnp.float32) + bo_ref[0]
    x = x + attn

    # ---------------- MLP branch: x + c_proj(QuickGELU(c_fc(LN2(x)))) --------
    # TODO(synk): on v7x, tile the hidden dim (512/1024-wide chunks with an f32
    # accumulator) so w_fc, w_proj and h1 are never simultaneously resident.
    xn2 = _layernorm(x, ln2_g_ref[0], ln2_b_ref[0])
    h1 = jnp.dot(xn2.astype(cdt), wfc_ref[...],
                 preferred_element_type=jnp.float32) + bfc_ref[0]
    h1 = h1 * jax.nn.sigmoid(1.702 * h1)             # QuickGELU in f32 (keep f32 on v5e)
    h2 = jnp.dot(h1.astype(cdt), wproj_ref[...],
                 preferred_element_type=jnp.float32) + bproj_ref[0]
    o_ref[...] = (x + h2).astype(o_ref.dtype)


def _prep_layer(p, n_head, compute_dtype=COMPUTE_DTYPE):
    """Kernel-friendly weight layout: fused QKV, 1/sqrt(dh) folded into W_q/b_q,
    matmul weights in bf16 (TODO(synk): fp8 on v7x), biases / LN params f32 (1, dim)."""
    D = p['ln1_g'].shape[0]
    dh = D // n_head
    scale = 1.0 / (dh ** 0.5)
    f32 = jnp.float32

    w_qkv = p['in_proj_weight'].T                               # (D, 3D)
    b_qkv = p['in_proj_bias']                                   # (3D,)
    col_scale = jnp.concatenate([jnp.full((D,), scale, f32), jnp.ones((2 * D,), f32)])
    w_qkv = w_qkv * col_scale[None, :]
    b_qkv = b_qkv * col_scale

    return {
        'ln1_g': p['ln1_g'][None, :].astype(f32),
        'ln1_b': p['ln1_b'][None, :].astype(f32),
        'w_qkv': w_qkv.astype(compute_dtype),
        'b_qkv': b_qkv[None, :].astype(f32),
        'w_o': p['out_proj_weight'].T.astype(compute_dtype),
        'b_o': p['out_proj_bias'][None, :].astype(f32),
        'ln2_g': p['ln2_g'][None, :].astype(f32),
        'ln2_b': p['ln2_b'][None, :].astype(f32),
        'w_fc': p['w_fc'].T.astype(compute_dtype),
        'b_fc': p['b_fc'][None, :].astype(f32),
        'w_proj': p['w_proj'].T.astype(compute_dtype),
        'b_proj': p['b_proj'][None, :].astype(f32),
    }


def prep_text_encoder_params(params, n_head, compute_dtype=COMPUTE_DTYPE):
    """One-time weight prep, hoisted OUT of the jitted forward (no per-call transpose /
    scale-fold / bf16 cast of the whole transformer). Also runs the Buffered(1) probe."""
    _buffered_weight_mode()
    f32 = jnp.float32
    return {
        'layers': [_prep_layer(lp, n_head, compute_dtype) for lp in params['layers']],
        'positional_embedding': params['positional_embedding'].astype(f32),
        'ln_final_g': params['ln_final_g'][None, :].astype(f32),
        'ln_final_b': params['ln_final_b'][None, :].astype(f32),
        'text_projection': params['text_projection'].astype(f32),
    }


def residual_attention_block(x, prepped, n_head, *, causal=True, target_rows=256):
    """x: (N, L, D) float32 activations. Returns (N, L, D) float32.
    TODO(synk): optionally carry the residual stream in bf16 between layers (halves
    per-layer activation HBM traffic, most valuable on v5e/v6e)."""
    N, L, D = x.shape
    assert D % n_head == 0
    tb = _pick_tb(N, L, target_rows)              # use target_rows=128 on v5e
    rows = tb * L
    x2 = x.reshape(N * L, D)                      # free metadata reshape -> lane-dense blocks

    weight_args = [
        prepped['ln1_g'], prepped['ln1_b'],
        prepped['w_qkv'], prepped['b_qkv'],
        prepped['w_o'], prepped['b_o'],
        prepped['ln2_g'], prepped['ln2_b'],
        prepped['w_fc'], prepped['b_fc'],
        prepped['w_proj'], prepped['b_proj'],
    ]

    in_specs = [pl.BlockSpec((rows, D), lambda i: (i, 0))] + [_const_spec(a) for a in weight_args]

    # Explicit VMEM budget: f32 in/out activation blocks (double-buffered) + weights
    # (single- or double-buffered) + the largest f32 intermediate (qkv / MLP hidden).
    hidden = prepped['w_fc'].shape[1]
    weight_bytes = sum(int(a.size) * a.dtype.itemsize for a in weight_args)
    w_buf = 1 if _BUFFERED_WEIGHTS_OK else 2
    act_bytes = rows * D * 4 * 2 * 2
    tmp_bytes = rows * max(3 * D, hidden) * 4 * 2
    vmem_limit = int(min(100 * 1024 * 1024,
                         max(32 * 1024 * 1024,
                             1.3 * (act_bytes + w_buf * weight_bytes + tmp_bytes))))

    out = pl.pallas_call(
        partial(block_kernel, n_head=n_head, tb=tb, seq_len=L, causal=causal),
        out_shape=jax.ShapeDtypeStruct((N * L, D), x.dtype),
        grid=(N // tb,),
        in_specs=in_specs,
        out_specs=pl.BlockSpec((rows, D), lambda i: (i, 0)),
        compiler_params=pltpu.CompilerParams(
            dimension_semantics=("parallel",),
            vmem_limit_bytes=vmem_limit),
    )(x2, *weight_args)
    return out.reshape(N, L, D)


# --------------------------------------------------------------------------- #
# Epilogue kernel: ln_final + text_projection on the already-gathered EOT rows
# --------------------------------------------------------------------------- #
def ln_final_project_kernel(x_ref, g_ref, b_ref, proj_ref, o_ref):
    xn = _layernorm(x_ref[...], g_ref[0], b_ref[0])
    o_ref[...] = jnp.dot(xn, proj_ref[...],
                         preferred_element_type=jnp.float32).astype(o_ref.dtype)


def ln_final_project(x_eot, ln_g, ln_b, text_projection):
    """x_eot: (N, D) f32 EOT-token rows. Returns (N, E) f32.
    TODO(synk): tile over batch (row blocks multiple of 8) for very large N."""
    N, D = x_eot.shape
    E = text_projection.shape[1]
    return pl.pallas_call(
        ln_final_project_kernel,
        out_shape=jax.ShapeDtypeStruct((N, E), x_eot.dtype),
        grid=(1,),
        in_specs=[pl.BlockSpec((N, D), lambda i: (0, 0)),
                  pl.BlockSpec((1, D), lambda i: (0, 0)),
                  pl.BlockSpec((1, D), lambda i: (0, 0)),
                  pl.BlockSpec((D, E), lambda i: (0, 0))],
        out_specs=pl.BlockSpec((N, E), lambda i: (0, 0)),
    )(x_eot, ln_g, ln_b, text_projection)


# --------------------------------------------------------------------------- #
# Full TextEncoder forward
# --------------------------------------------------------------------------- #
def text_encoder_forward(prompts, tokenized_prompts, prepped, n_head, causal=True):
    """Pallas TextEncoder.forward (eval mode, no dropout).
    prompts: (N, L, D) f32; tokenized_prompts: (N, L) int32; prepped = prep_text_encoder_params(...).
    Returns (N, E). NOTE: PyTorch's permute(1,0,2) pair exists only for nn.MultiheadAttention's
    seq-first convention; we stay in (N, L, D) and skip two full HBM round trips."""
    N, L, D = prompts.shape
    # Positional add, EOT argmax and the N-row EOT gather are trivial memory-bound ops left to XLA.
    x = prompts.astype(jnp.float32) + prepped['positional_embedding'][None, :, :]
    for lp in prepped['layers']:
        x = residual_attention_block(x, lp, n_head, causal=causal)
    eot = jnp.argmax(tokenized_prompts, axis=-1)
    x_eot = x[jnp.arange(N), eot]                        # (N, D) EOT rows
    return ln_final_project(x_eot, prepped['ln_final_g'], prepped['ln_final_b'],
                            prepped['text_projection'])


# --------------------------------------------------------------------------- #
# Pure-JAX reference (PyTorch semantics) and parameter construction
# --------------------------------------------------------------------------- #
def _ref_ln(t, g, b, eps=1e-5):
    mu = t.mean(-1, keepdims=True)
    var = ((t - mu) ** 2).mean(-1, keepdims=True)
    return (t - mu) / jnp.sqrt(var + eps) * g + b


def _ref_block(x, p, n_head, causal=True):               # x: (N, L, D)
    N, L, D = x.shape
    dh = D // n_head
    xn = _ref_ln(x, p['ln1_g'], p['ln1_b'])
    qkv = xn @ p['in_proj_weight'].T + p['in_proj_bias']
    q, k, v = jnp.split(qkv, 3, axis=-1)

    def heads(t):
        return t.reshape(N, L, n_head, dh).transpose(0, 2, 1, 3)

    qh, kh, vh = heads(q), heads(k), heads(v)
    s = jnp.einsum('nhld,nhmd->nhlm', qh, kh) / jnp.sqrt(jnp.float32(dh))
    if causal:
        s = s + jnp.triu(jnp.full((L, L), -1e9, jnp.float32), k=1)
    a = jax.nn.softmax(s, axis=-1)
    o = jnp.einsum('nhlm,nhmd->nhld', a, vh).transpose(0, 2, 1, 3).reshape(N, L, D)
    o = o @ p['out_proj_weight'].T + p['out_proj_bias']
    x = x + o
    xn2 = _ref_ln(x, p['ln2_g'], p['ln2_b'])
    h = xn2 @ p['w_fc'].T + p['b_fc']
    h = h * jax.nn.sigmoid(1.702 * h)
    return x + h @ p['w_proj'].T + p['b_proj']


def reference_text_encoder(prompts, tokenized_prompts, params, n_head, causal=True):
    x = prompts + params['positional_embedding'][None, :, :]
    for p in params['layers']:
        x = _ref_block(x, p, n_head, causal=causal)
    x = _ref_ln(x, params['ln_final_g'], params['ln_final_b'])
    eot = jnp.argmax(tokenized_prompts, axis=-1)
    return x[jnp.arange(x.shape[0]), eot] @ params['text_projection']


def make_params(key, n_layers, seq_len, d_model, hidden_dim, embed_dim):
    keys = jax.random.split(key, n_layers + 1)
    std = 0.02
    layers = []
    for i in range(n_layers):
        ks = jax.random.split(keys[i], 10)
        layers.append({
            'in_proj_weight': std * jax.random.normal(ks[0], (3 * d_model, d_model), jnp.float32),
            'in_proj_bias': std * jax.random.normal(ks[1], (3 * d_model,), jnp.float32),
            'out_proj_weight': std * jax.random.normal(ks[2], (d_model, d_model), jnp.float32),
            'out_proj_bias': std * jax.random.normal(ks[3], (d_model,), jnp.float32),
            'ln1_g': 1.0 + 0.1 * jax.random.normal(ks[4], (d_model,), jnp.float32),
            'ln1_b': 0.01 * jax.random.normal(ks[5], (d_model,), jnp.float32),
            'ln2_g': 1.0 + 0.1 * jax.random.normal(ks[6], (d_model,), jnp.float32),
            'ln2_b': 0.01 * jax.random.normal(ks[7], (d_model,), jnp.float32),
            'w_fc': std * jax.random.normal(ks[8], (hidden_dim, d_model), jnp.float32),
            'b_fc': std * jax.random.normal(ks[9], (hidden_dim,), jnp.float32),
            'w_proj': std * jax.random.normal(jax.random.fold_in(ks[8], 1),
                                              (d_model, hidden_dim), jnp.float32),
            'b_proj': jnp.zeros((d_model,), jnp.float32),
        })
    kp, kt, kg, kb = jax.random.split(keys[n_layers], 4)
    return {
        'layers': layers,
        'positional_embedding': 0.01 * jax.random.normal(kp, (seq_len, d_model), jnp.float32),
        'ln_final_g': 1.0 + 0.1 * jax.random.normal(kg, (d_model,), jnp.float32),
        'ln_final_b': 0.01 * jax.random.normal(kb, (d_model,), jnp.float32),
        'text_projection': std * jax.random.normal(kt, (d_model, embed_dim), jnp.float32),
    }


if __name__ == "__main__":
    N, L, D = 2, 8, 32            # batch, seq_len, d_model
    n_head = 4
    n_layers = 2
    hidden = 4 * D                # CLIP MLP ratio
    E = 32                        # text embedding dim

    key = jax.random.PRNGKey(0)
    kx, kt, kp = jax.random.split(key, 3)
    prompts = jax.random.normal(kx, (N, L, D), jnp.float32)
    params = make_params(kp, n_layers, L, D, hidden, E)

    # Fake tokenized prompts: small random ids with the (large) EOT id at known positions.
    eot_pos = jnp.array([5, 3], dtype=jnp.int32)
    tok = jax.random.randint(kt, (N, L), 1, 400, dtype=jnp.int32)
    tok = tok.at[jnp.arange(N), eot_pos].set(49407)

    prepped = prep_text_encoder_params(params, n_head)       # hoisted out of jit
    fwd = jax.jit(partial(text_encoder_forward, n_head=n_head))
    out = jax.block_until_ready(fwd(prompts, tok, prepped))

    ref = reference_text_encoder(prompts, tok, params, n_head)
    assert out.shape == (N, E)
    err = float(jnp.max(jnp.abs(out - ref)))
    # Matmul inputs are bf16 (f32 accumulation), so the tolerance is looser than a pure-f32 check.
    assert jnp.allclose(out, ref, atol=1e-2, rtol=1e-2), f"max abs err {err}"
    print("KERNEL_OK")
</pallas_src>

<mosaic_0001>
module attributes {stable_mosaic.version = 11 : i64} {
  func.func @_probe_kernel(%arg0: i32, %arg1: memref<8x128xf32, #tpu.memory_space<vmem>>, %arg2: memref<8x128xf32, #tpu.memory_space<vmem>>, %arg3: memref<8x128xf32, #tpu.memory_space<vmem>>) attributes {dimension_semantics = [#tpu.dimension_semantics<arbitrary>], iteration_bounds = array<i64: 2>, scalar_prefetch = 0 : i64, scratch_operands = 0 : i64, tpu.core_type = #tpu.core_type<tc>, window_params = [{transform_indices = @transform_0, window_bounds = array<i64: 8, 128>}, {pipeline_mode = #tpu.pipeline_mode<synchronous>, transform_indices = @transform_1, window_bounds = array<i64: 8, 128>}, {transform_indices = @transform_2, window_bounds = array<i64: 8, 128>}]} {
    %c0 = arith.constant 0 : index
    %c0_0 = arith.constant 0 : index
    %0 = vector.load %arg1[%c0, %c0_0] : memref<8x128xf32, #tpu.memory_space<vmem>>, vector<8x128xf32>
    %c0_1 = arith.constant 0 : index
    %c0_2 = arith.constant 0 : index
    %1 = vector.load %arg2[%c0_1, %c0_2] : memref<8x128xf32, #tpu.memory_space<vmem>>, vector<8x128xf32>
    %2 = arith.addf %0, %1 : vector<8x128xf32>
    %c0_3 = arith.constant 0 : index
    %c0_4 = arith.constant 0 : index
    %3 = vector.load %arg3[%c0_3, %c0_4] : memref<8x128xf32, #tpu.memory_space<vmem>>, vector<8x128xf32>
    tpu.vector_store %arg3[%c0_3, %c0_4], %2 {strides = array<i32>} : memref<8x128xf32, #tpu.memory_space<vmem>>, vector<8x128xf32>,
    return
  }
  func.func @transform_0(%arg0: i32) -> (i32, i32) {
    %c0_i32 = arith.constant 0 : i32
    %c0_i32_0 = arith.constant 0 : i32
    return %arg0, %c0_i32 : i32, i32
  }
  func.func @transform_1(%arg0: i32) -> (i32, i32) {
    %c0_i32 = arith.constant 0 : i32
    %c0_i32_0 = arith.constant 0 : i32
    %c0_i32_1 = arith.constant 0 : i32
    return %c0_i32, %c0_i32_0 : i32, i32
  }
  func.func @transform_2(%arg0: i32) -> (i32, i32) {
    %c0_i32 = arith.constant 0 : i32
    %c0_i32_0 = arith.constant 0 : i32
    return %arg0, %c0_i32 : i32, i32
  }
}

module attributes {stable_mosaic.version = 11 : i64} {
  func.func @block_kernel(%arg0: i32, %arg1: memref<8x32xf32, #tpu.memory_space<vmem>>, %arg2: memref<1x32xf32, #tpu.memory_space<vmem>>, %arg3: memref<1x32xf32, #tpu.memory_space<vmem>>, %arg4: memref<32x96xbf16, #tpu.memory_space<vmem>>, %arg5: memref<1x96xf32, #tpu.memory_space<vmem>>, %arg6: memref<32x32xbf16, #tpu.memory_space<vmem>>, %arg7: memref<1x32xf32, #tpu.memory_space<vmem>>, %arg8: memref<1x32xf32, #tpu.memory_space<vmem>>, %arg9: memref<1x32xf32, #tpu.memory_space<vmem>>, %arg10: memref<32x128xbf16, #tpu.memory_space<vmem>>, %arg11: memref<1x128xf32, #tpu.memory_space<vmem>>, %arg12: memref<128x32xbf16, #tpu.memory_space<vmem>>, %arg13: memref<1x32xf32, #tpu.memory_space<vmem>>, %arg14: memref<8x32xf32, #tpu.memory_space<vmem>>) attributes {dimension_semantics = [#tpu.dimension_semantics<parallel>], iteration_bounds = array<i64: 2>, scalar_prefetch = 0 : i64, scratch_operands = 0 : i64, tpu.core_type = #tpu.core_type<tc>, window_params = [{transform_indices = @transform_0, window_bounds = array<i64: 8, 32>}, {pipeline_mode = #tpu.pipeline_mode<synchronous>, transform_indices = @transform_1, window_bounds = array<i64: 1, 32>}, {pipeline_mode = #tpu.pipeline_mode<synchronous>, transform_indices = @transform_2, window_bounds = array<i64: 1, 32>}, {pipeline_mode = #tpu.pipeline_mode<synchronous>, transform_indices = @transform_3, window_bounds = array<i64: 32, 96>}, {pipeline_mode = #tpu.pipeline_mode<synchronous>, transform_indices = @transform_4, window_bounds = array<i64: 1, 96>}, {pipeline_mode = #tpu.pipeline_mode<synchronous>, transform_indices = @transform_5, window_bounds = array<i64: 32, 32>}, {pipeline_mode = #tpu.pipeline_mode<synchronous>, transform_indices = @transform_6, window_bounds = array<i64: 1, 32>}, {pipeline_mode = #tpu.pipeline_mode<synchronous>, transform_indices = @transform_7, window_bounds = array<i64: 1, 32>}, {pipeline_mode = #tpu.pipeline_mode<synchronous>, transform_indices = @transform_8, window_bounds = array<i64: 1, 32>}, {pipeline_mode = #tpu.pipeline_mode<synchronous>, transform_indices = @transform_9, window_bounds = array<i64: 32, 128>}, {pipeline_mode = #tpu.pipeline_mode<synchronous>, transform_indices = @transform_10, window_bounds = array<i64: 1, 128>}, {pipeline_mode = #tpu.pipeline_mode<synchronous>, transform_indices = @transform_11, window_bounds = array<i64: 128, 32>}, {pipeline_mode = #tpu.pipeline_mode<synchronous>, transform_indices = @transform_12, window_bounds = array<i64: 1, 32>}, {transform_indices = @transform_13, window_bounds = array<i64: 8, 32>}]} {
    %c0 = arith.constant 0 : index
    %c0_0 = arith.constant 0 : index
    %0 = vector.load %arg1[%c0, %c0_0] : memref<8x32xf32, #tpu.memory_space<vmem>>, vector<8x32xf32>
    %c0_1 = arith.constant 0 : index
    %c0_2 = arith.constant 0 : index
    %1 = vector.load %arg2[%c0_1, %c0_2] : memref<1x32xf32, #tpu.memory_space<vmem>>, vector<1x32xf32>
    %2 = vector.shape_cast %1 : vector<1x32xf32> to vector<32xf32>
    %c0_3 = arith.constant 0 : index
    %c0_4 = arith.constant 0 : index
    %3 = vector.load %arg3[%c0_3, %c0_4] : memref<1x32xf32, #tpu.memory_space<vmem>>, vector<1x32xf32>
    %4 = vector.shape_cast %3 : vector<1x32xf32> to vector<32xf32>
    %cst = arith.constant dense<0.000000e+00> : vector<8xf32>
    %5 = vector.multi_reduction <add>, %0, %cst [1] : vector<8x32xf32> to vector<8xf32>
    %6 = vector.shape_cast %5 : vector<8xf32> to vector<8x1xf32>
    %cst_5 = arith.constant 3.200000e+01 : f32
    %7 = vector.broadcast %cst_5 : f32 to vector<8x1xf32>
    %8 = arith.divf %6, %7 : vector<8x1xf32>
    %9 = vector.broadcast %8 : vector<8x1xf32> to vector<8x32xf32>
    %10 = arith.subf %0, %9 : vector<8x32xf32>
    %11 = arith.mulf %10, %10 : vector<8x32xf32>
    %cst_6 = arith.constant dense<0.000000e+00> : vector<8xf32>
    %12 = vector.multi_reduction <add>, %11, %cst_6 [1] : vector<8x32xf32> to vector<8xf32>
    %13 = vector.shape_cast %12 : vector<8xf32> to vector<8x1xf32>
    %cst_7 = arith.constant 3.200000e+01 : f32
    %14 = vector.broadcast %cst_7 : f32 to vector<8x1xf32>
    %15 = arith.divf %13, %14 : vector<8x1xf32>
    %16 = vector.broadcast %8 : vector<8x1xf32> to vector<8x32xf32>
    %17 = arith.subf %0, %16 : vector<8x32xf32>
    %cst_8 = arith.constant 9.99999974E-6 : f32
    %18 = vector.broadcast %cst_8 : f32 to vector<8x1xf32>
    %19 = arith.addf %15, %18 : vector<8x1xf32>
    %20 = math.rsqrt %19 : vector<8x1xf32>
    %21 = vector.broadcast %20 : vector<8x1xf32> to vector<8x32xf32>
    %22 = arith.mulf %17, %21 : vector<8x32xf32>
    %23 = vector.shape_cast %2 : vector<32xf32> to vector<1x32xf32>
    %24 = vector.broadcast %23 : vector<1x32xf32> to vector<8x32xf32>
    %25 = arith.mulf %22, %24 : vector<8x32xf32>
    %26 = vector.shape_cast %4 : vector<32xf32> to vector<1x32xf32>
    %27 = vector.broadcast %26 : vector<1x32xf32> to vector<8x32xf32>
    %28 = arith.addf %25, %27 : vector<8x32xf32>
    %29 = arith.truncf %28 : vector<8x32xf32> to vector<8x32xbf16>
    %c0_9 = arith.constant 0 : index
    %c0_10 = arith.constant 0 : index
    %30 = vector.load %arg4[%c0_9, %c0_10] : memref<32x96xbf16, #tpu.memory_space<vmem>>, vector<32x96xbf16>
    %cst_11 = arith.constant dense<0.000000e+00> : vector<8x96xf32>
    %31 = tpu.matmul %29, %30, %cst_11 {dimension_numbers = #tpu.dot_dimension_numbers<[1], [0], [0], [1], [0, 0, 1, 1], [], []>} : vector<8x32xbf16>, vector<32x96xbf16>, vector<8x96xf32> -> vector<8x96xf32>
    %c0_12 = arith.constant 0 : index
    %c0_13 = arith.constant 0 : index
    %32 = vector.load %arg5[%c0_12, %c0_13] : memref<1x96xf32, #tpu.memory_space<vmem>>, vector<1x96xf32>
    %33 = vector.shape_cast %32 : vector<1x96xf32> to vector<96xf32>
    %34 = vector.shape_cast %33 : vector<96xf32> to vector<1x96xf32>
    %35 = vector.broadcast %34 : vector<1x96xf32> to vector<8x96xf32>
    %36 = arith.addf %31, %35 : vector<8x96xf32>
    %37 = arith.truncf %36 : vector<8x96xf32> to vector<8x96xbf16>
    %38 = vector.extract_strided_slice %37 {offsets = [0, 0], sizes = [8, 32], strides = [1, 1]} : vector<8x96xbf16> to vector<8x32xbf16>
    %39 = vector.shape_cast %38 : vector<8x32xbf16> to vector<1x8x32xbf16>
    %40 = vector.extract_strided_slice %37 {offsets = [0, 32], sizes = [8, 32], strides = [1, 1]} : vector<8x96xbf16> to vector<8x32xbf16>
    %41 = vector.shape_cast %40 : vector<8x32xbf16> to vector<1x8x32xbf16>
    %42 = vector.extract_strided_slice %37 {offsets = [0, 64], sizes = [8, 32], strides = [1, 1]} : vector<8x96xbf16> to vector<8x32xbf16>
    %43 = vector.shape_cast %42 : vector<8x32xbf16> to vector<1x8x32xbf16>
    %44 = tpu.iota {dimensions = array<i32: 0>} : vector<8x8xi32>
    %45 = tpu.iota {dimensions = array<i32: 1>} : vector<8x8xi32>
    %46 = arith.cmpi sgt, %45, %44 : vector<8x8xi32>
    %cst_14 = arith.constant -1.000000e+09 : f32
    %cst_15 = arith.constant 0.000000e+00 : f32
    %47 = vector.broadcast %cst_14 : f32 to vector<8x8xf32>
    %48 = vector.broadcast %cst_15 : f32 to vector<8x8xf32>
    %49 = arith.select %46, %47, %48 : vector<8x8xi1>, vector<8x8xf32>
    %50 = vector.extract_strided_slice %39 {offsets = [0, 0, 0], sizes = [1, 8, 8], strides = [1, 1, 1]} : vector<1x8x32xbf16> to vector<1x8x8xbf16>
    %51 = vector.extract_strided_slice %41 {offsets = [0, 0, 0], sizes = [1, 8, 8], strides = [1, 1, 1]} : vector<1x8x32xbf16> to vector<1x8x8xbf16>
    "tpu.trace_start"() <{level = 10 : i32, message = "bqd,bkd->bqk"}> : () -> ()
    %cst_16 = arith.constant dense<0.000000e+00> : vector<1x8x8xf32>
    %52 = tpu.matmul %50, %51, %cst_16 {dimension_numbers = #tpu.dot_dimension_numbers<[2], [2], [1], [1], [0, 0, 0, 1, 1, 1], [0], [0]>} : vector<1x8x8xbf16>, vector<1x8x8xbf16>, vector<1x8x8xf32> -> vector<1x8x8xf32>
    "tpu.trace_stop"() : () -> ()
    %53 = vector.shape_cast %49 : vector<8x8xf32> to vector<1x8x8xf32>
    %54 = arith.addf %52, %53 : vector<1x8x8xf32>
    %cst_17 = arith.constant dense<0xFF800000> : vector<1x8xf32>
    %55 = vector.multi_reduction <maximumf>, %54, %cst_17 [2] : vector<1x8x8xf32> to vector<1x8xf32>
    %56 = vector.shape_cast %55 : vector<1x8xf32> to vector<1x8x1xf32>
    %57 = vector.broadcast %56 : vector<1x8x1xf32> to vector<1x8x8xf32>
    %58 = arith.subf %54, %57 : vector<1x8x8xf32>
    %59 = math.exp %58 : vector<1x8x8xf32>
    %cst_18 = arith.constant dense<0.000000e+00> : vector<1x8xf32>
    %60 = vector.multi_reduction <add>, %59, %cst_18 [2] : vector<1x8x8xf32> to vector<1x8xf32>
    %61 = vector.shape_cast %60 : vector<1x8xf32> to vector<1x8x1xf32>
    %62 = tpu.reciprocal %61 {approx = true} : vector<1x8x1xf32> -> vector<1x8x1xf32>
    %63 = vector.broadcast %62 : vector<1x8x1xf32> to vector<1x8x8xf32>
    %64 = arith.mulf %59, %63 : vector<1x8x8xf32>
    %65 = arith.truncf %64 : vector<1x8x8xf32> to vector<1x8x8xbf16>
    %66 = vector.extract_strided_slice %43 {offsets = [0, 0, 0], sizes = [1, 8, 8], strides = [1, 1, 1]} : vector<1x8x32xbf16> to vector<1x8x8xbf16>
    "tpu.trace_start"() <{level = 10 : i32, message = "bqk,bkd->bqd"}> : () -> ()
    %cst_19 = arith.constant dense<0.000000e+00> : vector<1x8x8xf32>
    %67 = tpu.matmul %65, %66, %cst_19 {dimension_numbers = #tpu.dot_dimension_numbers<[2], [1], [1], [2], [0, 0, 0, 1, 1, 2], [0], [0]>} : vector<1x8x8xbf16>, vector<1x8x8xbf16>, vector<1x8x8xf32> -> vector<1x8x8xf32>
    "tpu.trace_stop"() : () -> ()
    %68 = vector.extract_strided_slice %39 {offsets = [0, 0, 8], sizes = [1, 8, 8], strides = [1, 1, 1]} : vector<1x8x32xbf16> to vector<1x8x8xbf16>
    %69 = vector.extract_strided_slice %41 {offsets = [0, 0, 8], sizes = [1, 8, 8], strides = [1, 1, 1]} : vector<1x8x32xbf16> to vector<1x8x8xbf16>
    "tpu.trace_start"() <{level = 10 : i32, message = "bqd,bkd->bqk"}> : () -> ()
    %cst_20 = arith.constant dense<0.000000e+00> : vector<1x8x8xf32>
    %70 = tpu.matmul %68, %69, %cst_20 {dimension_numbers = #tpu.dot_dimension_numbers<[2], [2], [1], [1], [0, 0, 0, 1, 1, 1], [0], [0]>} : vector<1x8x8xbf16>, vector<1x8x8xbf16>, vector<1x8x8xf32> -> vector<1x8x8xf32>
    "tpu.trace_stop"() : () -> ()
    %71 = vector.shape_cast %49 : vector<8x8xf32> to vector<1x8x8xf32>
    %72 = arith.addf %70, %71 : vector<1x8x8xf32>
    %cst_21 = arith.constant dense<0xFF800000> : vector<1x8xf32>
    %73 = vector.multi_reduction <maximumf>, %72, %cst_21 [2] : vector<1x8x8xf32> to vector<1x8xf32>
    %74 = vector.shape_cast %73 : vector<1x8xf32> to vector<1x8x1xf32>
    %75 = vector.broadcast %74 : vector<1x8x1xf32> to vector<1x8x8xf32>
    %76 = arith.subf %72, %75 : vector<1x8x8xf32>
    %77 = math.exp %76 : vector<1x8x8xf32>
    %cst_22 = arith.constant dense<0.000000e+00> : vector<1x8xf32>
    %78 = vector.multi_reduction <add>, %77, %cst_22 [2] : vector<1x8x8xf32> to vector<1x8xf32>
    %79 = vector.shape_cast %78 : vector<1x8xf32> to vector<1x8x1xf32>
    %80 = tpu.reciprocal %79 {approx = true} : vector<1x8x1xf32> -> vector<1x8x1xf32>
    %81 = vector.broadcast %80 : vector<1x8x1xf32> to vector<1x8x8xf32>
    %82 = arith.mulf %77, %81 : vector<1x8x8xf32>
    %83 = arith.truncf %82 : vector<1x8x8xf32> to vector<1x8x8xbf16>
    %84 = vector.extract_strided_slice %43 {offsets = [0, 0, 8], sizes = [1, 8, 8], strides = [1, 1, 1]} : vector<1x8x32xbf16> to vector<1x8x8xbf16>
    "tpu.trace_start"() <{level = 10 : i32, message = "bqk,bkd->bqd"}> : () -> ()
    %cst_23 = arith.constant dense<0.000000e+00> : vector<1x8x8xf32>
    %85 = tpu.matmul %83, %84, %cst_23 {dimension_numbers = #tpu.dot_dimension_numbers<[2], [1], [1], [2], [0, 0, 0, 1, 1, 2], [0], [0]>} : vector<1x8x8xbf16>, vector<1x8x8xbf16>, vector<1x8x8xf32> -> vector<1x8x8xf32>
    "tpu.trace_stop"() : () -> ()
    %86 = vector.extract_strided_slice %39 {offsets = [0, 0, 16], sizes = [1, 8, 8], strides = [1, 1, 1]} : vector<1x8x32xbf16> to vector<1x8x8xbf16>
    %87 = vector.extract_strided_slice %41 {offsets = [0, 0, 16], sizes = [1, 8, 8], strides = [1, 1, 1]} : vector<1x8x32xbf16> to vector<1x8x8xbf16>
    "tpu.trace_start"() <{level = 10 : i32, message = "bqd,bkd->bqk"}> : () -> ()
    %cst_24 = arith.constant dense<0.000000e+00> : vector<1x8x8xf32>
    %88 = tpu.matmul %86, %87, %cst_24 {dimension_numbers = #tpu.dot_dimension_numbers<[2], [2], [1], [1], [0, 0, 0, 1, 1, 1], [0], [0]>} : vector<1x8x8xbf16>, vector<1x8x8xbf16>, vector<1x8x8xf32> -> vector<1x8x8xf32>
    "tpu.trace_stop"() : () -> ()
    %89 = vector.shape_cast %49 : vector<8x8xf32> to vector<1x8x8xf32>
    %90 = arith.addf %88, %89 : vector<1x8x8xf32>
    %cst_25 = arith.constant dense<0xFF800000> : vector<1x8xf32>
    %91 = vector.multi_reduction <maximumf>, %90, %cst_25 [2] : vector<1x8x8xf32> to vector<1x8xf32>
    %92 = vector.shape_cast %91 : vector<1x8xf32> to vector<1x8x1xf32>
    %93 = vector.broadcast %92 : vector<1x8x1xf32> to vector<1x8x8xf32>
    %94 = arith.subf %90, %93 : vector<1x8x8xf32>
    %95 = math.exp %94 : vector<1x8x8xf32>
    %cst_26 = arith.constant dense<0.000000e+00> : vector<1x8xf32>
    %96 = vector.multi_reduction <add>, %95, %cst_26 [2] : vector<1x8x8xf32> to vector<1x8xf32>
    %97 = vector.shape_cast %96 : vector<1x8xf32> to vector<1x8x1xf32>
    %98 = tpu.reciprocal %97 {approx = true} : vector<1x8x1xf32> -> vector<1x8x1xf32>
    %99 = vector.broadcast %98 : vector<1x8x1xf32> to vector<1x8x8xf32>
    %100 = arith.mulf %95, %99 : vector<1x8x8xf32>
    %101 = arith.truncf %100 : vector<1x8x8xf32> to vector<1x8x8xbf16>
    %102 = vector.extract_strided_slice %43 {offsets = [0, 0, 16], sizes = [1, 8, 8], strides = [1, 1, 1]} : vector<1x8x32xbf16> to vector<1x8x8xbf16>
    "tpu.trace_start"() <{level = 10 : i32, message = "bqk,bkd->bqd"}> : () -> ()
    %cst_27 = arith.constant dense<0.000000e+00> : vector<1x8x8xf32>
    %103 = tpu.matmul %101, %102, %cst_27 {dimension_numbers = #tpu.dot_dimension_numbers<[2], [1], [1], [2], [0, 0, 0, 1, 1, 2], [0], [0]>} : vector<1x8x8xbf16>, vector<1x8x8xbf16>, vector<1x8x8xf32> -> vector<1x8x8xf32>
    "tpu.trace_stop"() : () -> ()
    %104 = vector.extract_strided_slice %39 {offsets = [0, 0, 24], sizes = [1, 8, 8], strides = [1, 1, 1]} : vector<1x8x32xbf16> to vector<1x8x8xbf16>
    %105 = vector.extract_strided_slice %41 {offsets = [0, 0, 24], sizes = [1, 8, 8], strides = [1, 1, 1]} : vector<1x8x32xbf16> to vector<1x8x8xbf16>
    "tpu.trace_start"() <{level = 10 : i32, message = "bqd,bkd->bqk"}> : () -> ()
    %cst_28 = arith.constant dense<0.000000e+00> : vector<1x8x8xf32>
    %106 = tpu.matmul %104, %105, %cst_28 {dimension_numbers = #tpu.dot_dimension_numbers<[2], [2], [1], [1], [0, 0, 0, 1, 1, 1], [0], [0]>} : vector<1x8x8xbf16>, vector<1x8x8xbf16>, vector<1x8x8xf32> -> vector<1x8x8xf32>
    "tpu.trace_stop"() : () -> ()
    %107 = vector.shape_cast %49 : vector<8x8xf32> to vector<1x8x8xf32>
    %108 = arith.addf %106, %107 : vector<1x8x8xf32>
    %cst_29 = arith.constant dense<0xFF800000> : vector<1x8xf32>
    %109 = vector.multi_reduction <maximumf>, %108, %cst_29 [2] : vector<1x8x8xf32> to vector<1x8xf32>
    %110 = vector.shape_cast %109 : vector<1x8xf32> to vector<1x8x1xf32>
    %111 = vector.broadcast %110 : vector<1x8x1xf32> to vector<1x8x8xf32>
    %112 = arith.subf %108, %111 : vector<1x8x8xf32>
    %113 = math.exp %112 : vector<1x8x8xf32>
    %cst_30 = arith.constant dense<0.000000e+00> : vector<1x8xf32>
    %114 = vector.multi_reduction <add>, %113, %cst_30 [2] : vector<1x8x8xf32> to vector<1x8xf32>
    %115 = vector.shape_cast %114 : vector<1x8xf32> to vector<1x8x1xf32>
    %116 = tpu.reciprocal %115 {approx = true} : vector<1x8x1xf32> -> vector<1x8x1xf32>
    %117 = vector.broadcast %116 : vector<1x8x1xf32> to vector<1x8x8xf32>
    %118 = arith.mulf %113, %117 : vector<1x8x8xf32>
    %119 = arith.truncf %118 : vector<1x8x8xf32> to vector<1x8x8xbf16>
    %120 = vector.extract_strided_slice %43 {offsets = [0, 0, 24], sizes = [1, 8, 8], strides = [1, 1, 1]} : vector<1x8x32xbf16> to vector<1x8x8xbf16>
    "tpu.trace_start"() <{level = 10 : i32, message = "bqk,bkd->bqd"}> : () -> ()
    %cst_31 = arith.constant dense<0.000000e+00> : vector<1x8x8xf32>
    %121 = tpu.matmul %119, %120, %cst_31 {dimension_numbers = #tpu.dot_dimension_numbers<[2], [1], [1], [2], [0, 0, 0, 1, 1, 2], [0], [0]>} : vector<1x8x8xbf16>, vector<1x8x8xbf16>, vector<1x8x8xf32> -> vector<1x8x8xf32>
    "tpu.trace_stop"() : () -> ()
    %122 = tpu.concatenate %67, %85, %103, %121 in 2 : vector<1x8x8xf32>, vector<1x8x8xf32>, vector<1x8x8xf32>, vector<1x8x8xf32> -> vector<1x8x32xf32>
    %123 = vector.shape_cast %122 : vector<1x8x32xf32> to vector<8x32xf32>
    %124 = arith.truncf %123 : vector<8x32xf32> to vector<8x32xbf16>
    %c0_32 = arith.constant 0 : index
    %c0_33 = arith.constant 0 : index
    %125 = vector.load %arg6[%c0_32, %c0_33] : memref<32x32xbf16, #tpu.memory_space<vmem>>, vector<32x32xbf16>
    %cst_34 = arith.constant dense<0.000000e+00> : vector<8x32xf32>
    %126 = tpu.matmul %124, %125, %cst_34 {dimension_numbers = #tpu.dot_dimension_numbers<[1], [0], [0], [1], [0, 0, 1, 1], [], []>} : vector<8x32xbf16>, vector<32x32xbf16>, vector<8x32xf32> -> vector<8x32xf32>
    %c0_35 = arith.constant 0 : index
    %c0_36 = arith.constant 0 : index
    %127 = vector.load %arg7[%c0_35, %c0_36] : memref<1x32xf32, #tpu.memory_space<vmem>>, vector<1x32xf32>
    %128 = vector.shape_cast %127 : vector<1x32xf32> to vector<32xf32>
    %129 = vector.shape_cast %128 : vector<32xf32> to vector<1x32xf32>
    %130 = vector.broadcast %129 : vector<1x32xf32> to vector<8x32xf32>
    %131 = arith.addf %126, %130 : vector<8x32xf32>
    %132 = arith.addf %0, %131 : vector<8x32xf32>
    %c0_37 = arith.constant 0 : index
    %c0_38 = arith.constant 0 : index
    %133 = vector.load %arg8[%c0_37, %c0_38] : memref<1x32xf32, #tpu.memory_space<vmem>>, vector<1x32xf32>
    %134 = vector.shape_cast %133 : vector<1x32xf32> to vector<32xf32>
    %c0_39 = arith.constant 0 : index
    %c0_40 = arith.constant 0 : index
    %135 = vector.load %arg9[%c0_39, %c0_40] : memref<1x32xf32, #tpu.memory_space<vmem>>, vector<1x32xf32>
    %136 = vector.shape_cast %135 : vector<1x32xf32> to vector<32xf32>
    %cst_41 = arith.constant dense<0.000000e+00> : vector<8xf32>
    %137 = vector.multi_reduction <add>, %132, %cst_41 [1] : vector<8x32xf32> to vector<8xf32>
    %138 = vector.shape_cast %137 : vector<8xf32> to vector<8x1xf32>
    %cst_42 = arith.constant 3.200000e+01 : f32
    %139 = vector.broadcast %cst_42 : f32 to vector<8x1xf32>
    %140 = arith.divf %138, %139 : vector<8x1xf32>
    %141 = vector.broadcast %140 : vector<8x1xf32> to vector<8x32xf32>
    %142 = arith.subf %132, %141 : vector<8x32xf32>
    %143 = arith.mulf %142, %142 : vector<8x32xf32>
    %cst_43 = arith.constant dense<0.000000e+00> : vector<8xf32>
    %144 = vector.multi_reduction <add>, %143, %cst_43 [1] : vector<8x32xf32> to vector<8xf32>
    %145 = vector.shape_cast %144 : vector<8xf32> to vector<8x1xf32>
    %cst_44 = arith.constant 3.200000e+01 : f32
    %146 = vector.broadcast %cst_44 : f32 to vector<8x1xf32>
    %147 = arith.divf %145, %146 : vector<8x1xf32>
    %148 = vector.broadcast %140 : vector<8x1xf32> to vector<8x32xf32>
    %149 = arith.subf %132, %148 : vector<8x32xf32>
    %cst_45 = arith.constant 9.99999974E-6 : f32
    %150 = vector.broadcast %cst_45 : f32 to vector<8x1xf32>
    %151 = arith.addf %147, %150 : vector<8x1xf32>
    %152 = math.rsqrt %151 : vector<8x1xf32>
    %153 = vector.broadcast %152 : vector<8x1xf32> to vector<8x32xf32>
    %154 = arith.mulf %149, %153 : vector<8x32xf32>
    %155 = vector.shape_cast %134 : vector<32xf32> to vector<1x32xf32>
    %156 = vector.broadcast %155 : vector<1x32xf32> to vector<8x32xf32>
    %157 = arith.mulf %154, %156 : vector<8x32xf32>
    %158 = vector.shape_cast %136 : vector<32xf32> to vector<1x32xf32>
    %159 = vector.broadcast %158 : vector<1x32xf32> to vector<8x32xf32>
    %160 = arith.addf %157, %159 : vector<8x32xf32>
    %161 = arith.truncf %160 : vector<8x32xf32> to vector<8x32xbf16>
    %c0_46 = arith.constant 0 : index
    %c0_47 = arith.constant 0 : index
    %162 = vector.load %arg10[%c0_46, %c0_47] : memref<32x128xbf16, #tpu.memory_space<vmem>>, vector<32x128xbf16>
    %cst_48 = arith.constant dense<0.000000e+00> : vector<8x128xf32>
    %163 = tpu.matmul %161, %162, %cst_48 {dimension_numbers = #tpu.dot_dimension_numbers<[1], [0], [0], [1], [0, 0, 1, 1], [], []>} : vector<8x32xbf16>, vector<32x128xbf16>, vector<8x128xf32> -> vector<8x128xf32>
    %c0_49 = arith.constant 0 : index
    %c0_50 = arith.constant 0 : index
    %164 = vector.load %arg11[%c0_49, %c0_50] : memref<1x128xf32, #tpu.memory_space<vmem>>, vector<1x128xf32>
    %165 = vector.shape_cast %164 : vector<1x128xf32> to vector<128xf32>
    %166 = vector.shape_cast %165 : vector<128xf32> to vector<1x128xf32>
    %167 = vector.broadcast %166 : vector<1x128xf32> to vector<8x128xf32>
    %168 = arith.addf %163, %167 : vector<8x128xf32>
    %cst_51 = arith.constant 1.702000e+00 : f32
    %169 = vector.broadcast %cst_51 : f32 to vector<8x128xf32>
    %170 = arith.mulf %169, %168 : vector<8x128xf32>
    %171 = arith.negf %170 : vector<8x128xf32>
    %172 = math.exp %171 : vector<8x128xf32>
    %cst_52 = arith.constant 1.000000e+00 : f32
    %173 = vector.broadcast %cst_52 : f32 to vector<8x128xf32>
    %174 = arith.addf %173, %172 : vector<8x128xf32>
    %175 = arith.divf %173, %174 : vector<8x128xf32>
    %176 = arith.mulf %168, %175 : vector<8x128xf32>
    %177 = arith.truncf %176 : vector<8x128xf32> to vector<8x128xbf16>
    %c0_53 = arith.constant 0 : index
    %c0_54 = arith.constant 0 : index
    %178 = vector.load %arg12[%c0_53, %c0_54] : memref<128x32xbf16, #tpu.memory_space<vmem>>, vector<128x32xbf16>
    %cst_55 = arith.constant dense<0.000000e+00> : vector<8x32xf32>
    %179 = tpu.matmul %177, %178, %cst_55 {dimension_numbers = #tpu.dot_dimension_numbers<[1], [0], [0], [1], [0, 0, 1, 1], [], []>} : vector<8x128xbf16>, vector<128x32xbf16>, vector<8x32xf32> -> vector<8x32xf32>
    %c0_56 = arith.constant 0 : index
    %c0_57 = arith.constant 0 : index
    %180 = vector.load %arg13[%c0_56, %c0_57] : memref<1x32xf32, #tpu.memory_space<vmem>>, vector<1x32xf32>
    %181 = vector.shape_cast %180 : vector<1x32xf32> to vector<32xf32>
    %182 = vector.shape_cast %181 : vector<32xf32> to vector<1x32xf32>
    %183 = vector.broadcast %182 : vector<1x32xf32> to vector<8x32xf32>
    %184 = arith.addf %179, %183 : vector<8x32xf32>
    %185 = arith.addf %132, %184 : vector<8x32xf32>
    %c0_58 = arith.constant 0 : index
    %c0_59 = arith.constant 0 : index
    %186 = vector.load %arg14[%c0_58, %c0_59] : memref<8x32xf32, #tpu.memory_space<vmem>>, vector<8x32xf32>
    tpu.vector_store %arg14[%c0_58, %c0_59], %185 {strides = array<i32>} : memref<8x32xf32, #tpu.memory_space<vmem>>, vector<8x32xf32>,
    return
  }
  func.func @transform_0(%arg0: i32) -> (i32, i32) {
    %c0_i32 = arith.constant 0 : i32
    %c0_i32_0 = arith.constant 0 : i32
    return %arg0, %c0_i32 : i32, i32
  }
  func.func @transform_1(%arg0: i32) -> (i32, i32) {
    %c0_i32 = arith.constant 0 : i32
    %c0_i32_0 = arith.constant 0 : i32
    %c0_i32_1 = arith.constant 0 : i32
    return %c0_i32, %c0_i32_0 : i32, i32
  }
  func.func @transform_2(%arg0: i32) -> (i32, i32) {
    %c0_i32 = arith.constant 0 : i32
    %c0_i32_0 = arith.constant 0 : i32
    %c0_i32_1 = arith.constant 0 : i32
    return %c0_i32, %c0_i32_0 : i32, i32
  }
  func.func @transform_3(%arg0: i32) -> (i32, i32) {
    %c0_i32 = arith.constant 0 : i32
    %c0_i32_0 = arith.constant 0 : i32
    %c0_i32_1 = arith.constant 0 : i32
    return %c0_i32, %c0_i32_0 : i32, i32
  }
  func.func @transform_4(%arg0: i32) -> (i32, i32) {
    %c0_i32 = arith.constant 0 : i32
    %c0_i32_0 = arith.constant 0 : i32
    %c0_i32_1 = arith.constant 0 : i32
    return %c0_i32, %c0_i32_0 : i32, i32
  }
  func.func @transform_5(%arg0: i32) -> (i32, i32) {
    %c0_i32 = arith.constant 0 : i32
    %c0_i32_0 = arith.constant 0 : i32
    %c0_i32_1 = arith.constant 0 : i32
    return %c0_i32, %c0_i32_0 : i32, i32
  }
  func.func @transform_6(%arg0: i32) -> (i32, i32) {
    %c0_i32 = arith.constant 0 : i32
    %c0_i32_0 = arith.constant 0 : i32
    %c0_i32_1 = arith.constant 0 : i32
    return %c0_i32, %c0_i32_0 : i32, i32
  }
  func.func @transform_7(%arg0: i32) -> (i32, i32) {
    %c0_i32 = arith.constant 0 : i32
    %c0_i32_0 = arith.constant 0 : i32
    %c0_i32_1 = arith.constant 0 : i32
    return %c0_i32, %c0_i32_0 : i32, i32
  }
  func.func @transform_8(%arg0: i32) -> (i32, i32) {
    %c0_i32 = arith.constant 0 : i32
    %c0_i32_0 = arith.constant 0 : i32
    %c0_i32_1 = arith.constant 0 : i32
    return %c0_i32, %c0_i32_0 : i32, i32
  }
  func.func @transform_9(%arg0: i32) -> (i32, i32) {
    %c0_i32 = arith.constant 0 : i32
    %c0_i32_0 = arith.constant 0 : i32
    %c0_i32_1 = arith.constant 0 : i32
    return %c0_i32, %c0_i32_0 : i32, i32
  }
  func.func @transform_10(%arg0: i32) -> (i32, i32) {
    %c0_i32 = arith.constant 0 : i32
    %c0_i32_0 = arith.constant 0 : i32
    %c0_i32_1 = arith.constant 0 : i32
    return %c0_i32, %c0_i32_0 : i32, i32
  }
  func.func @transform_11(%arg0: i32) -> (i32, i32) {
    %c0_i32 = arith.constant 0 : i32
    %c0_i32_0 = arith.constant 0 : i32
    %c0_i32_1 = arith.constant 0 : i32
    return %c0_i32, %c0_i32_0 : i32, i32
  }
  func.func @transform_12(%arg0: i32) -> (i32, i32) {
    %c0_i32 = arith.constant 0 : i32
    %c0_i32_0 = arith.constant 0 : i32
    %c0_i32_1 = arith.constant 0 : i32
    return %c0_i32, %c0_i32_0 : i32, i32
  }
  func.func @transform_13(%arg0: i32) -> (i32, i32) {
    %c0_i32 = arith.constant 0 : i32
    %c0_i32_0 = arith.constant 0 : i32
    return %arg0, %c0_i32 : i32, i32
  }
}

module attributes {stable_mosaic.version = 11 : i64} {
  func.func @ln_final_project_kernel(%arg0: i32, %arg1: memref<2x32xf32, #tpu.memory_space<vmem>>, %arg2: memref<1x32xf32, #tpu.memory_space<vmem>>, %arg3: memref<1x32xf32, #tpu.memory_space<vmem>>, %arg4: memref<32x32xf32, #tpu.memory_space<vmem>>, %arg5: memref<2x32xf32, #tpu.memory_space<vmem>>) attributes {dimension_semantics = [#tpu.dimension_semantics<arbitrary>], iteration_bounds = array<i64: 1>, scalar_prefetch = 0 : i64, scratch_operands = 0 : i64, tpu.core_type = #tpu.core_type<tc>, window_params = [{pipeline_mode = #tpu.pipeline_mode<synchronous>, transform_indices = @transform_0, window_bounds = array<i64: 2, 32>}, {pipeline_mode = #tpu.pipeline_mode<synchronous>, transform_indices = @transform_1, window_bounds = array<i64: 1, 32>}, {pipeline_mode = #tpu.pipeline_mode<synchronous>, transform_indices = @transform_2, window_bounds = array<i64: 1, 32>}, {pipeline_mode = #tpu.pipeline_mode<synchronous>, transform_indices = @transform_3, window_bounds = array<i64: 32, 32>}, {pipeline_mode = #tpu.pipeline_mode<synchronous>, transform_indices = @transform_4, window_bounds = array<i64: 2, 32>}]} {
    %c0 = arith.constant 0 : index
    %c0_0 = arith.constant 0 : index
    %0 = vector.load %arg1[%c0, %c0_0] : memref<2x32xf32, #tpu.memory_space<vmem>>, vector<2x32xf32>
    %c0_1 = arith.constant 0 : index
    %c0_2 = arith.constant 0 : index
    %1 = vector.load %arg2[%c0_1, %c0_2] : memref<1x32xf32, #tpu.memory_space<vmem>>, vector<1x32xf32>
    %2 = vector.shape_cast %1 : vector<1x32xf32> to vector<32xf32>
    %c0_3 = arith.constant 0 : index
    %c0_4 = arith.constant 0 : index
    %3 = vector.load %arg3[%c0_3, %c0_4] : memref<1x32xf32, #tpu.memory_space<vmem>>, vector<1x32xf32>
    %4 = vector.shape_cast %3 : vector<1x32xf32> to vector<32xf32>
    %cst = arith.constant dense<0.000000e+00> : vector<2xf32>
    %5 = vector.multi_reduction <add>, %0, %cst [1] : vector<2x32xf32> to vector<2xf32>
    %6 = vector.shape_cast %5 : vector<2xf32> to vector<2x1xf32>
    %cst_5 = arith.constant 3.200000e+01 : f32
    %7 = vector.broadcast %cst_5 : f32 to vector<2x1xf32>
    %8 = arith.divf %6, %7 : vector<2x1xf32>
    %9 = vector.broadcast %8 : vector<2x1xf32> to vector<2x32xf32>
    %10 = arith.subf %0, %9 : vector<2x32xf32>
    %11 = arith.mulf %10, %10 : vector<2x32xf32>
    %cst_6 = arith.constant dense<0.000000e+00> : vector<2xf32>
    %12 = vector.multi_reduction <add>, %11, %cst_6 [1] : vector<2x32xf32> to vector<2xf32>
    %13 = vector.shape_cast %12 : vector<2xf32> to vector<2x1xf32>
    %cst_7 = arith.constant 3.200000e+01 : f32
    %14 = vector.broadcast %cst_7 : f32 to vector<2x1xf32>
    %15 = arith.divf %13, %14 : vector<2x1xf32>
    %16 = vector.broadcast %8 : vector<2x1xf32> to vector<2x32xf32>
    %17 = arith.subf %0, %16 : vector<2x32xf32>
    %cst_8 = arith.constant 9.99999974E-6 : f32
    %18 = vector.broadcast %cst_8 : f32 to vector<2x1xf32>
    %19 = arith.addf %15, %18 : vector<2x1xf32>
    %20 = math.rsqrt %19 : vector<2x1xf32>
    %21 = vector.broadcast %20 : vector<2x1xf32> to vector<2x32xf32>
    %22 = arith.mulf %17, %21 : vector<2x32xf32>
    %23 = vector.shape_cast %2 : vector<32xf32> to vector<1x32xf32>
    %24 = vector.broadcast %23 : vector<1x32xf32> to vector<2x32xf32>
    %25 = arith.mulf %22, %24 : vector<2x32xf32>
    %26 = vector.shape_cast %4 : vector<32xf32> to vector<1x32xf32>
    %27 = vector.broadcast %26 : vector<1x32xf32> to vector<2x32xf32>
    %28 = arith.addf %25, %27 : vector<2x32xf32>
    %c0_9 = arith.constant 0 : index
    %c0_10 = arith.constant 0 : index
    %29 = vector.load %arg4[%c0_9, %c0_10] : memref<32x32xf32, #tpu.memory_space<vmem>>, vector<32x32xf32>
    %cst_11 = arith.constant dense<0.000000e+00> : vector<2x32xf32>
    %30 = tpu.matmul %28, %29, %cst_11 {dimension_numbers = #tpu.dot_dimension_numbers<[1], [0], [0], [1], [0, 0, 1, 1], [], []>} : vector<2x32xf32>, vector<32x32xf32>, vector<2x32xf32> -> vector<2x32xf32>
    %c0_12 = arith.constant 0 : index
    %c0_13 = arith.constant 0 : index
    %31 = vector.load %arg5[%c0_12, %c0_13] : memref<2x32xf32, #tpu.memory_space<vmem>>, vector<2x32xf32>
    tpu.vector_store %arg5[%c0_12, %c0_13], %30 {strides = array<i32>} : memref<2x32xf32, #tpu.memory_space<vmem>>, vector<2x32xf32>,
    return
  }
  func.func @transform_0(%arg0: i32) -> (i32, i32) {
    %c0_i32 = arith.constant 0 : i32
    %c0_i32_0 = arith.constant 0 : i32
    %c0_i32_1 = arith.constant 0 : i32
    return %c0_i32, %c0_i32_0 : i32, i32
  }
  func.func @transform_1(%arg0: i32) -> (i32, i32) {
    %c0_i32 = arith.constant 0 : i32
    %c0_i32_0 = arith.constant 0 : i32
    %c0_i32_1 = arith.constant 0 : i32
    return %c0_i32, %c0_i32_0 : i32, i32
  }
  func.func @transform_2(%arg0: i32) -> (i32, i32) {
    %c0_i32 = arith.constant 0 : i32
    %c0_i32_0 = arith.constant 0 : i32
    %c0_i32_1 = arith.constant 0 : i32
    return %c0_i32, %c0_i32_0 : i32, i32
  }
  func.func @transform_3(%arg0: i32) -> (i32, i32) {
    %c0_i32 = arith.constant 0 : i32
    %c0_i32_0 = arith.constant 0 : i32
    %c0_i32_1 = arith.constant 0 : i32
    return %c0_i32, %c0_i32_0 : i32, i32
  }
  func.func @transform_4(%arg0: i32) -> (i32, i32) {
    %c0_i32 = arith.constant 0 : i32
    %c0_i32_0 = arith.constant 0 : i32
    %c0_i32_1 = arith.constant 0 : i32
    return %c0_i32, %c0_i32_0 : i32, i32
  }
}

</mosaic_0001>

<bundles_post_ra>
// kernel: tpu_custom_call.1
= control target key start
LH: loop header
LB: loop body
LE: loop exit
PB: predicated region body
PF: predicated region fallthrough
CT: control target
= control target key end

     0   :  { %7 = vsyncpa [#allocation3], 0  ;;  %s690_s0 = inlined_call_operand.hbm [shape: f32[16,128], index: 0, kind: input, shape index: {}]   ;;  %s691_s1 = inlined_call_operand.hbm [shape: f32[8,128], index: 1, kind: input, shape index: {}]   ;;  %s692_s2 = inlined_call_operand.hbm [shape: f32[16,128], index: 2, kind: output, shape index: {}]  }
   0x1   :  { %9 = vsyncpa [#allocation3 + $0x1], 0 }
   0x2   :  { %10 = vsyncpa [#allocation6], 0 }
   0x3   :  { %11 = vsyncpa [#allocation4], 0 }
   0x4   :  { %13 = vsyncpa [#allocation4 + $0x1], 0  ;;  %s489_s9 = smov 0   ;;  %s491_s10 = smov 0  }
   0x5   :  { %s493_s11 = smov 0   ;;  %s495_s12 = smov 0  }
   0x6 LB: > { %s510_s13 = sadd.s32 4294967295, %s469_s12   ;;  %s270_s14 = sadd.s32 4294967294, %s469_s12   ;;  %s469_s12 = sphi %s495_s12, %s716_s12   ;;  %s465_s11 = sphi %s493_s11, %s715_s11   ;;  %s461_s10 = sphi %s491_s10, %s714_s10   ;;  %s457_s9 = sphi %s489_s9, %s713_s9  }
   0x7   : > { %p39_p0 = scmp.ne.s32.totalorder %s461_s10, %s457_s9  ;;  %p693_p1 = scmp.eq.s32.totalorder %s510_s13, 0 }
   0x8   : > { %p90_p3 = scmp.eq.s32.totalorder %s270_s14, 1  ;;  %p271_p5 = scmp.ge.s32.totalorder %s469_s12, 1 }
   0x9   : > { %p519_p4 = por %p693_p1, %p39_p0  ;;  %p97_p7 = scmp.lt.s32.totalorder %s469_s12, 3 }
   0xa   : > { %p524_p6 = por %p90_p3, %p39_p0  ;;  %s471_s18 = smov [#allocation5]  }
   0xb   : > { %s696_s15 = scalar_select %p519_p4, 1, 0 }
   0xc   : > { %s697_s16 = scalar_select %p524_p6, 1, 0 }
   0xd   : > { %p529_p8 = pnand %p271_p5, %p97_p7  ;;  %s110_s19 = sshll.u32 %s471_s18, 4  ;;  %s111_s19 = int_to_ptr.vmem [resolvable:$true] %s110_s19 }
   0xe   : > { %s537_s20 = sadd.s32 1, %s469_s12   ;;  %s26_s24 = sadd.s32 1, %s465_s11 }
   0xf   : > { %s698_s17 = scalar_select %p529_p8, 1, 0 }
  0x10   : > { %p292_p10 = pneg %p529_p8  ;;  %s23_s22 = ssub.s32 %s469_s12, %s537_s20 }
  0x11   : > { %p547_p12 = scmp.eq.s32.totalorder %s23_s22, 0  ;;  %s341_s27 = scalar_lea.hbm %s691_s1, 128 }
  0x12   : > { %p541_p11 = pnand %p292_p10, %p693_p1  ;;  %p342_p0 = scmp.ne.s32.totalorder %s691_s1, %s341_s27 }
  0x13   : > { %s700_s23 = scalar_select %p547_p12, 1, 0 }
  0x14   : > { %p343_p3 = pneg %p541_p11  ;;  %p348_p10 = scmp.lt.u32.totalorder %s341_s27, %s691_s1 }
  0x16   : > { %p344_p5 = pnand %p343_p3, %p342_p0 }
  0x18   : > { %p345_p7 = pneg %p344_p5 }
  0x1a   : > { %p350_p9 = pnand %p348_p10, %p345_p7 }
  0x1c   : > { %353 = shalt.err (!%p350_p9)
}
  0x1d   : > { %s354_s4 = scalar_lea.vmem %s111_s19, 128  ;;  %p362_p6 = scmp.lt.s32.totalorder %s111_s19, %s111_s19 }
  0x1e   : > { %p355_p1 = scmp.ne.s32.totalorder %s111_s19, %s354_s4  ;;  %p363_p4 = scmp.lt.s32.totalorder %s354_s4, %s354_s4 }
  0x20   : > { %p357_p2 = pnand %p355_p1, %p343_p3  ;;  %p364_p8 = por %p363_p4, %p362_p6 }
  0x22   : > { %p358_p13 = pneg %p357_p2 }
  0x24   : > { %p365_p12 = pnand %p364_p8, %p358_p13 }
  0x26   : > { %368 = shalt.err (!%p365_p12)
}
  0x27   : > { %295 = dma.hbm_to_vmem [thread:$0]  (!%p541_p11), %s691_s1, 128, %s111_s19, [#allocation6]  }
  0x28   : > { %p701_p1 = scmp.ne.s32.totalorder %s700_s23, 0  ;;  %p34_p2 = scmp.eq.s32.totalorder %s469_s12, 0 }
  0x29   : > { %p702_p4 = scmp.ne.s32.totalorder %s465_s11, %s461_s10  ;;  %p703_p6 = scmp.eq.s32.totalorder %s510_s13, 1 }
  0x2a   : > { %s573_s7 = scalar_select %p701_p1, %s465_s11, %s26_s24  }
  0x2b   : > { %p581_p8 = por %p703_p6, %p702_p4  ;;  %p305_p9 = scmp.lt.s32.totalorder %s469_s12, 2 }
  0x2c   : > { %s121_s14 = sand.u32 1, %s465_s11   ;;  %p705_p12 = pmov %p702_p4 }
  0x2d   : > { %s274_s18 = sshll.u32 %s121_s14, 3  ;;  %s275_s21 = sshll.u32 %s469_s12, 7 }
  0x2e   : > { %p35_p13 = por %p34_p2, %p705_p12  ;;  %s594_s19 = scalar_lea.hbm %s690_s0, %s275_s21 }
  0x2f   : > { %s125_s23 = scalar_lea.vmem [#allocation2], %s274_s18  ;;  %s122_s27 = scalar_lea.sflag [#allocation3], %s121_s14 }
  0x30   : > { %s132_s24 = sshll.u32 %s125_s23, 4  ;;  %p596_p11 = pnand %p305_p9, %p35_p13  ;;  %s600_s24 = int_to_ptr.vmem [resolvable:$true] %s132_s24 }
  0x31   : > { %s369_s28 = scalar_lea.hbm %s594_s19, 128  ;;  %s374_s3 = scalar_lea.hbm %s690_s0, 256 }
  0x32   : > { %p370_p0 = scmp.ne.s32.totalorder %s594_s19, %s369_s28  ;;  %p371_p3 = pneg %p596_p11 }
  0x33   : > { %p375_p10 = scmp.lt.u32.totalorder %s594_s19, %s690_s0  ;;  %p376_p1 = scmp.lt.u32.totalorder %s374_s3, %s369_s28 }
  0x34   : > { %p372_p5 = pnand %p371_p3, %p370_p0  ;;  %p378_p4 = scmp.lt.u32.totalorder %s369_s28, %s594_s19 }
  0x35   : > { %p377_p2 = por %p376_p1, %p375_p10 }
  0x36   : > { %p373_p7 = pneg %p372_p5 }
  0x37   : > { %p379_p6 = por %p378_p4, %p377_p2 }
  0x39   : > { %p380_p9 = pnand %p379_p6, %p373_p7 }
  0x3b   : > { %383 = shalt.err (!%p380_p9)
}
  0x3c   : > { %s384_s6 = scalar_lea.vmem %s600_s24, 128  ;;  %s472_s14 = smov [#allocation2]  }
  0x3d   : > { %p385_p12 = scmp.ne.s32.totalorder %s600_s24, %s384_s6  ;;  %s389_s18 = sshll.u32 %s472_s14, 4  ;;  %s390_s18 = int_to_ptr.vmem [resolvable:$false] %s389_s18 }
  0x3e   : > { %s391_s21 = scalar_lea.vmem %s390_s18, 256  ;;  %p392_p5 = scmp.lt.s32.totalorder %s600_s24, %s390_s18 }
  0x3f   : > { %p387_p13 = pnand %p385_p12, %p371_p3  ;;  %p393_p10 = scmp.lt.s32.totalorder %s391_s21, %s384_s6 }
  0x41   : > { %p388_p0 = pneg %p387_p13  ;;  %p394_p1 = por %p393_p10, %p392_p5 }
  0x43   : > { %p395_p2 = pnand %p394_p1, %p388_p0 }
  0x45   : > { %398 = shalt.err (!%p395_p2)
}
  0x46   : > { %299 = dma.hbm_to_vmem [thread:$0]  (!%p596_p11), %s594_s19, 128, %s600_s24, %s122_s27  }
  0x47   : > { %p707_p7 = scmp.ne.s32.totalorder %s698_s17, 0 }
  0x48   : > { %s630_s22 = sand.u32 (!%p707_p7), 1, %s461_s10   ;;  %p708_p3 = scmp.ne.s32.totalorder (!%p707_p7), %s696_s15, 0 }
  0x49   : > { %141 = sbr.rel (%p707_p7) target bundleno = 109 (0x6d), region = 28  ;;  %s277_s25 = sshll.u32 (!%p707_p7), %s630_s22, 3 }
  0x4a   : > { %s144_s23 = scalar_lea.sflag (!%p707_p7), [#allocation3], %s630_s22  ;;  %s147_s28 = scalar_lea.vmem (!%p707_p7), [#allocation2], %s277_s25 }
  0x50   : > { %444 = dma.done.wait (%p708_p3), %s144_s23, 128  }
  0x51   : > { %446 = vsyncadd (%p708_p3), %s144_s23, 4294967168  ;;  %p709_p4 = scmp.eq.s32.totalorder %s510_s13, 0 }
  0x53   : > { %448 = dma.done.wait (%p709_p4), [#allocation6], 128   ;;  %p710_p11 = pmov %p709_p4 }
  0x54   : > { %s171_s17 = scalar_lea.vmem [#allocation7], %s277_s25  ;;  %s281_s24 = sshll.u32 %s510_s13, 7  ;;  %v172_v0 = vld [vmem:[%s147_s28] sm:$0xff]  ;;  %v173_v1 = vld [vmem:[#allocation5] sm:$0xff] }
  0x55   : > { %450 = vsyncadd (%p710_p11), [#allocation6], 4294967168  ;;  %s190_s19 = sshll.u32 %s171_s17, 4  ;;  %v174_v2 = vadd.f32 %v173_v1, %v172_v0  ;;  %s648_s27 = scalar_lea.hbm %s692_s2, %s281_s24  ;;  %s643_s19 = int_to_ptr.vmem [resolvable:$true] %s190_s19 }
  0x56   : > { %s177_s29 = scalar_lea.sflag [#allocation4], %s630_s22  ;;  %s399_s30 = scalar_lea.vmem %s643_s19, 128 }
  0x57   : > { %175 = vst [vmem:[%s171_s17] sm:$0xff] %v174_v2  ;;  %p400_p6 = scmp.ne.s32.totalorder %s643_s19, %s399_s30  ;;  %s473_s13 = smov [#allocation7]  }
  0x58   : > { %s403_s3 = sshll.u32 %s473_s13, 4  ;;  %s404_s3 = int_to_ptr.vmem [resolvable:$false] %s403_s3 }
  0x59   : > { %p401_p9 = pnand %p400_p6, %p581_p8  ;;  %s405_s4 = scalar_lea.vmem %s404_s3, 256 }
  0x5a   : > { %p406_p13 = scmp.lt.s32.totalorder %s643_s19, %s404_s3  ;;  %p407_p0 = scmp.lt.s32.totalorder %s405_s4, %s399_s30 }
  0x5b   : > { %p402_p12 = pneg %p401_p9 }
  0x5c   : > { %p408_p5 = por %p407_p0, %p406_p13 }
  0x5e   : > { %p409_p10 = pnand %p408_p5, %p402_p12 }
  0x60   : > { %412 = shalt.err (!%p409_p10)
}
  0x61   : > { %s413_s5 = scalar_lea.hbm %s648_s27, 128  ;;  %s417_s18 = scalar_lea.hbm %s692_s2, 256 }
  0x62   : > { %p414_p1 = scmp.ne.s32.totalorder %s648_s27, %s413_s5  ;;  %p418_p3 = scmp.lt.u32.totalorder %s648_s27, %s692_s2 }
  0x63   : > { %p419_p4 = scmp.lt.u32.totalorder %s417_s18, %s413_s5  ;;  %p421_p6 = scmp.lt.u32.totalorder %s413_s5, %s648_s27 }
  0x64   : > { %p415_p2 = pnand %p414_p1, %p581_p8 }
  0x65   : > { %p420_p11 = por %p419_p4, %p418_p3 }
  0x66   : > { %p416_p7 = pneg %p415_p2 }
  0x67   : > { %p422_p9 = por %p421_p6, %p420_p11 }
  0x69   : > { %p423_p12 = pnand %p422_p9, %p416_p7 }
  0x6b   : > { %426 = shalt.err (!%p423_p12)
}
  0x6c   : > { %290 = dma.vmem_to_hbm [thread:$0]  (%p581_p8), %s643_s19, 128, %s648_s27, %s177_s29  }
  0x6d PF: > { %s202_s25 = sand.u32 1, %s457_s9   ;;  %p711_p13 = scmp.ne.s32.totalorder %s697_s16, 0 }
  0x6e   : > { %p712_p0 = scmp.ge.s32.totalorder %s469_s12, 2  ;;  %s203_s23 = scalar_lea.sflag [#allocation4], %s202_s25 }
  0x70   : > { %p301_p5 = pnand %p712_p0, %p711_p13 }
  0x72   : > { %452 = dma.done.wait (!%p301_p5), %s203_s23, 128  }
  0x73   : > { %454 = vsyncadd (!%p301_p5), %s203_s23, 4294967168  ;;  %p16_p10 = scmp.ge.s32.totalorder %s537_s20, 4   ;;  %s713_s9 = smov %s461_s10 }
  0x74   : > { %s714_s10 = smov %s465_s11  ;;  %s715_s11 = smov %s573_s7 }
  0x75   : > { %s716_s12 = smov %s537_s20  ;;  %18 = sbr.rel (!%p16_p10) target bundleno = 6 (0x6), region = 77 }
  0x7c   :  { %208 = vsyncpa [#allocation3], 1 }
  0x7d   :  { %210 = vsyncpa [#allocation3 + $0x1], 1 }
  0x7e   :  { %211 = vsyncpa [#allocation6], 1 }
  0x7f   :  { %212 = vsyncpa [#allocation4], 1 }
  0x80   :  { %214 = vsyncpa [#allocation4 + $0x1], 1 }

// kernel: text_encoder_forward.5
= control target key start
LH: loop header
LB: loop body
LE: loop exit
PB: predicated region body
PF: predicated region fallthrough
CT: control target
= control target key end

     0   :  { %vm21_vm0 = vcmask 254976   ;;  %s263_s0 = inlined_call_operand.vmem [shape: f32[2,32], index: 0, kind: input, shape index: {}]   ;;  %s264_s1 = inlined_call_operand.vmem [shape: f32[1,32], index: 1, kind: input, shape index: {}]   ;;  %s265_s2 = inlined_call_operand.vmem [shape: f32[1,32], index: 2, kind: input, shape index: {}]   ;;  %s266_s3 = inlined_call_operand.vmem [shape: f32[32,32], index: 3, kind: input, shape index: {}]   ;;  %s267_s4 = inlined_call_operand.hbm [shape: f32[2,32], index: 4, kind: output, shape index: {}]  }
   0x1   :  { %v18_v0 = vld [vmem:[%s263_s0] sm:$0x3] }
   0x2   :  { %9 = vsyncpa [#allocation3], 0  ;;  %v22_v1 = vsel %vm21_vm0, %v18_v0, 0.0  ;;  %v50_v7 = vld [vmem:[%s266_s3] sm:$0xff]  ;;  %v51_v8 = vld [vmem:[%s266_s3 + $0x8] sm:$0xff]  ;;  %v198_v10 = vmov 0.0|0.0  }
   0x3   :  { %23 = vadd.xlane.f32.xlu0 %v22_v1  ;;  %v52_v9 = vld [vmem:[%s266_s3 + $0x10] sm:$0xff]  ;;  %162 = vmatprep.subr.bf16.mxu0 %v198_v10  ;;  %v163_v11 = vpack.c.bf16 %v51_v8, %v50_v7  ;;  %v53_v12 = vld [vmem:[%s266_s3 + $0x18] sm:$0xff]  ;;  %vm199_vm1 = vmmov 0   ;;  %v200_v13 = vmov 0.0   ;;  %v143_v19 = vld [vmem:[%s264_s1] ss:$0 sm:$0xff] }
   0x4   :  { %159 = vmatprep.mubr.msk.f32.mxu0 %vm199_vm1, %v200_v13  ;;  %v166_v14 = vpack.c.bf16 %v53_v12, %v52_v9  ;;  %v144_v21 = vld [vmem:[%s265_s2] ss:$0 sm:$0xff]  ;;  %vm54_vm2 = vcmask 261120   ;;  %s201_s3 = smov [#allocation2]  }
   0x5   :  { %164 = vmatpush3.bf16.msra.mxu0 %v163_v11  ;;  %s135_s28 = sshll.u32 %s201_s3, 4  ;;  %s136_s28 = int_to_ptr.vmem [resolvable:$true] %s135_s28 }
   0x6   :  { %165 = vmatprep.subr.bf16.mxu0 %v198_v10  ;;  %s174_s29 = scalar_lea.vmem %s136_s28, 32  ;;  %p179_p1 = scmp.lt.s32.totalorder %s136_s28, %s136_s28 }
   0x7   :  { %p175_p0 = scmp.ne.s32.totalorder %s136_s28, %s174_s29  ;;  %p180_p2 = scmp.lt.s32.totalorder %s174_s29, %s174_s29 }
   0x9   :  { %167 = vmatpush3.bf16.msra.mxu0 %v166_v14  ;;  %p181_p3 = por %p180_p2, %p179_p1 }
   0xb   :  { %p182_p4 = pnand %p181_p3, %p175_p0 }
  0x90   :  { %v24_v2 = vpop.xlane.xlu0 %23 }
  0x91   :  { %v26_v3 = vmul.f32 0.03125, %v24_v2 }
  0x93   :  { %v27_v4 = vsub.f32 %v18_v0, %v26_v3 }
  0x95   :  { %v28_v5 = vmul.f32 %v27_v4, %v27_v4 }
  0x97   :  { %v29_v6 = vsel %vm21_vm0, %v28_v5, 0.0 }
  0x98   :  { %30 = vadd.xlane.f32.xlu0 %v29_v6 }
 0x125   :  { %v31_v15 = vpop.xlane.xlu0 %30 }
 0x126   :  { %v32_v16 = vmul.f32 0.03125, %v31_v15 }
 0x128   :  { %v33_v17 = vadd.f32 1e-05, %v32_v16 }
 0x12a   :  { %172 = vrsqrt.f32 %v33_v17 }
 0x134   :  { %v173_v18 = vpop.eup %172 }
 0x135   :  { %v35_v20 = vmul.f32 %v173_v18, %v27_v4 }
 0x137   :  { %v42_v22 = vmul.f32 %v143_v19, %v35_v20 }
 0x139   :  { %v49_v23 = vadd.f32 %v144_v21, %v42_v22 }
 0x13b   :  { %160 = vmatmul.mubr.msk.f32.vlgmr.msra.gmra.mrb[0].mxu0 %vm54_vm2, %v49_v23 }
 0x20e   :  { %v124_v24 = vpop.f32.mrb[0].mxu0 }
 0x20f   :  { %128 = vst.msk [vmem:[#allocation2] sm:$0x3] %vm21_vm0, %v124_v24  ;;  %v161_v25 = vpop.f32.mrb[1].mxu0 }
 0x210   :  { %185 = shalt.err (!%p182_p4)
}
 0x211   :  { %s186_s30 = scalar_lea.hbm %s267_s4, 32 }
 0x212   :  { %p187_p5 = scmp.ne.s32.totalorder %s267_s4, %s186_s30  ;;  %p190_p6 = scmp.lt.u32.totalorder %s186_s30, %s267_s4 }
 0x214   :  { %p192_p7 = pnand %p190_p6, %p187_p5 }
 0x216   :  { %195 = shalt.err (!%p192_p7)
}
 0x217   :  { %138 = dma.vmem_to_hbm [thread:$0]  %s136_s28, 32, %s267_s4, [#allocation3]  }
 0x218   :  { %196 = dma.done.wait [#allocation3], 32  }
 0x219   :  { %197 = vsyncadd [#allocation3], 4294967264 }
 0x21a   :  { %142 = vsyncpa [#allocation3], 1 }

// kernel: text_encoder_forward.3
= control target key start
LH: loop header
LB: loop body
LE: loop exit
PB: predicated region body
PF: predicated region fallthrough
CT: control target
= control target key end

     0   :  { %s1665_s25 = smov 0   ;;  %s1859_s0 = inlined_call_operand.vmem [shape: f32[16,32], index: 0, kind: input, shape index: {}]   ;;  %s1860_s1 = inlined_call_operand.vmem [shape: f32[1,32], index: 1, kind: input, shape index: {}]   ;;  %s1861_s2 = inlined_call_operand.vmem [shape: f32[1,32], index: 2, kind: input, shape index: {}]   ;;  %s1862_s3 = inlined_call_operand.vmem [shape: bf16[32,96], index: 3, kind: input, shape index: {}]   ;;  %s1863_s4 = inlined_call_operand.vmem [shape: f32[1,96], index: 4, kind: input, shape index: {}]   ;;  %s1864_s5 = inlined_call_operand.vmem [shape: bf16[32,32], index: 5, kind: input, shape index: {}]   ;;  %s1865_s6 = inlined_call_operand.vmem [shape: f32[1,32], index: 6, kind: input, shape index: {}]   ;;  %s1866_s7 = inlined_call_operand.vmem [shape: f32[1,32], index: 7, kind: input, shape index: {}]   ;;  %s1867_s8 = inlined_call_operand.vmem [shape: f32[1,32], index: 8, kind: input, shape index: {}]   ;;  %s1868_s9 = inlined_call_operand.vmem [shape: bf16[32,128], index: 9, kind: input, shape index: {}]   ;;  %s1869_s10 = inlined_call_operand.vmem [shape: f32[1,128], index: 10, kind: input, shape index: {}]   ;;  %s1870_s11 = inlined_call_operand.vmem [shape: bf16[128,32], index: 11, kind: input, shape index: {}]   ;;  %s1871_s12 = inlined_call_operand.vmem [shape: f32[1,32], index: 12, kind: input, shape index: {}]   ;;  %s1872_s13 = inlined_call_operand.vmem [shape: f32[16,32], index: 13, kind: output, shape index: {}]  }
   0x1 LB: > { %s1340_s26 = sadd.s32 4294967295, %s1577_s25   ;;  %p1344_p0 = scmp.ge.s32.totalorder %s1577_s25, 1  ;;  %s1577_s25 = sphi %s1665_s25, %s23_s25  }
   0x2   : > { %p386_p1 = scmp.lt.s32.totalorder %s1577_s25, 3 }
   0x4   : > { %p387_p2 = pnand %p1344_p0, %p386_p1 }
   0x5   : > { %p428_p3 = scmp.lt.s32.totalorder (!%p387_p2), %s1340_s26, 1  ;;  %vm440_vm0 = vcmask (!%p387_p2), 261120   ;;  %v1533_v7 = vld [vmem:[%s1862_s3] sm:$0xff] (!%p387_p2)   ;;  %v1579_v8 = vmov (!%p387_p2), 0.0   ;;  %vm1580_vm1 = vmmov (!%p387_p2), 0   ;;  %v1534_v9 = vld [vmem:[%s1862_s3 + $0x8] sm:$0xff] (!%p387_p2)   ;;  %v537_v38 = vlaneseq (!%p387_p2) }
   0x6   : > { %390 = sbr.rel (%p387_p2) target bundleno = 2586 (0xa1a), region = 72  ;;  %1417 = vmatprep.subr.bf16.mxu0 (!%p387_p2), %v1579_v8  ;;  %1421 = vmatprep.mubr.msk.bf16.mxu0 (!%p387_p2), %vm1580_vm1, %v1579_v8  ;;  %v1347_v14 = vld [vmem:[%s1860_s1] ss:$0 sm:$0xff] (!%p387_p2)  ;;  %s1581_s24 = smov (!%p387_p2), 120   ;;  %vm546_vm2 = vcmask (!%p387_p2), 64512   ;;  %vm610_vm4 = vcmask (!%p387_p2), 1043456  }
   0x7   : > { %1418 = vmatpush3.bf16.msra.mxu0 (!%p387_p2), %v1533_v7  ;;  %1437 = vmatprep.subr.bf16.mxu1 (!%p387_p2), %v1579_v8  ;;  %v1348_v16 = vld [vmem:[%s1861_s2] ss:$0 sm:$0xff] (!%p387_p2)  ;;  %s1582_s28 = smov (!%p387_p2), 96   ;;  %s1583_s29 = smov (!%p387_p2), 88   ;;  %v538_v39 = vshrl.u32 (!%p387_p2), %v537_v38, 7  ;;  %v540_v40 = vand.u32 (!%p387_p2), 127, %v537_v38 }
   0x8   : > { %1419 = vmatprep.subr.bf16.mxu0 (!%p387_p2), %v1579_v8  ;;  %1439 = vmatprep.mubr.msk.bf16.mxu1 (!%p387_p2), %vm1580_vm1, %v1579_v8  ;;  %v1349_v20 = vld [vmem:[%s1863_s4] ss:$0 sm:$0xff] (!%p387_p2)  ;;  %s1585_s14 = smov (!%p387_p2), 112   ;;  %s1586_s15 = smov (!%p387_p2), 72   ;;  %vm997_vm5 = vcmask (!%p387_p2), 130048   ;;  %vm999_vm6 = vcmask (!%p387_p2), 195584  }
   0x9   : > { %s1587_s16 = smov (!%p387_p2), 104   ;;  %vm541_vm3 = vcmp.gt.s32.totalorder (!%p387_p2), %v540_v40, %v538_v39  ;;  %s1588_s17 = smov (!%p387_p2), 64  }
   0xa   : > { %v542_v41 = vsel (!%p387_p2), %vm541_vm3, -1e+09, %v1579_v8  ;;  %s1589_s18 = smov (!%p387_p2), 56   ;;  %s1590_s19 = smov (!%p387_p2), 48  }
   0xb   : > { %1420 = vmatpush3.bf16.msra.mxu0 (!%p387_p2), %v1534_v9  ;;  %s1591_s20 = smov (!%p387_p2), 40   ;;  %s1592_s21 = smov (!%p387_p2), 8  }
   0xc   : > { %1425 = vmatprep.subr.bf16.mxu0 (!%p387_p2), %v1579_v8 }
   0xd   : > { %s1874_s26 = smov (!%p428_p3, %s1340_s26), 1 }
   0xe   : > { %s1345_s27 = sshll.u32 %s1874_s26, 3 }
   0xf   : > { %s431_s30 = scalar_lea.vmem %s1859_s0, %s1345_s27 }
  0x10   : > { %v1681_v0 = vld [vmem:[%s431_s30] sm:$0xff]  ;;  %s1584_s30 = smov 80  }
  0x11   : > { %v441_v1 = vsel %vm440_vm0, %v1681_v0, 0.0 }
  0x12   : > { %442 = vadd.xlane.f32.xlu0 %v441_v1 }
  0x9f   : > { %v443_v2 = vpop.xlane.xlu0 %442 }
  0xa0   : > { %v445_v3 = vmul.f32 0.03125, %v443_v2 }
  0xa2   : > { %v446_v4 = vsub.f32 %v1681_v0, %v445_v3 }
  0xa4   : > { %v447_v5 = vmul.f32 %v446_v4, %v446_v4 }
  0xa6   : > { %v448_v6 = vsel %vm440_vm0, %v447_v5, 0.0 }
  0xa7   : > { %449 = vadd.xlane.f32.xlu0 %v448_v6 }
 0x134   : > { %v450_v10 = vpop.xlane.xlu0 %449 }
 0x135   : > { %v451_v11 = vmul.f32 0.03125, %v450_v10 }
 0x137   : > { %v452_v12 = vadd.f32 1e-05, %v451_v11 }
 0x139   : > { %1547 = vrsqrt.f32 %v452_v12 }
 0x143   : > { %v1548_v13 = vpop.eup %1547 }
 0x144   : > { %v454_v15 = vmul.f32 %v1548_v13, %v446_v4 }
 0x146   : > { %v461_v17 = vmul.f32 %v1347_v14, %v454_v15 }
 0x148   : > { %v468_v18 = vadd.f32 %v1348_v16, %v461_v17 }
 0x14a   : > { %v469_v19 = vpack.c.bf16 %v468_v18, %v468_v18 }
 0x14c   : > { %1422 = vmatmul.mubr.msk.bf16.vlgmr.msra.gmra.mrb[0].mxu0 %vm440_vm0, %v469_v19 }
 0x14d   : > { %1427 = vmatprep.mubr.msk.bf16.mxu0 %vm1580_vm1, %v1579_v8 }
 0x21f   : > { %v530_v21 = vpop.f32.mrb[0].mxu0 }
 0x220   : > { %v531_v22 = vadd.f32 %v1349_v20, %v530_v21  ;;  %v1423_v23 = vpop.f32.mrb[1].mxu0 }
 0x221   : > { %v533_v24 = vpop.f32.mrb[2].mxu0 }
 0x222   : > { %v1713_v25 = vpack.c.bf16 %v531_v22, %v531_v22  ;;  %v1424_v26 = vpop.f32.mrb[3].mxu0 }
 0x224   : > { %654 = vrot.lane.b32.xlu0 %v1713_v25, %s1581_s24  ;;  %544 = vrot.lane.b32.xlu1 %v1713_v25, %s1582_s28 }
 0x228   : > { %656 = vrot.lane.b32.xlu1 %v1713_v25, %s1583_s29  ;;  %s1593_s29 = smov 16  }
 0x22c   : > { %766 = vrot.lane.b32.xlu1 %v1713_v25, %s1584_s30  ;;  %s1594_s30 = smov 24  }
 0x230   : > { %764 = vrot.lane.b32.xlu1 %v1713_v25, %s1585_s14 }
 0x234   : > { %876 = vrot.lane.b32.xlu1 %v1713_v25, %s1586_s15 }
 0x238   : > { %874 = vrot.lane.b32.xlu1 %v1713_v25, %s1587_s16 }
 0x296   : > { %v545_v27 = vpop.permute.xlu1 %544  ;;  %v655_v32 = vpop.permute.xlu0 %654 }
 0x297   : > { %v551_v28 = vsel %vm546_vm2, %v545_v27, 0 }
 0x298   : > { %1426 = vmatpush3.bf16.xpose.msra.mxu0 %v551_v28 }
 0x299   : > { %1431 = vmatprep.subr.bf16.mxu0 %v1579_v8 }
 0x29a   : > { %v657_v29 = vpop.permute.xlu1 %656 }
 0x29b   : > { %v662_v30 = vsel %vm546_vm2, %v657_v29, 0 }
 0x29c   : > { %1438 = vmatpush3.bf16.xpose.msra.mxu1 %v662_v30 }
 0x29d   : > { %1449 = vmatprep.subr.bf16.mxu1 %v1579_v8 }
 0x29e   : > { %v767_v31 = vpop.permute.xlu1 %766 }
 0x29f   : > { %1428 = vmatmul.mubr.msk.bf16.vlgmr.msra.gmra.mrb[4].mxu0 %vm546_vm2, %v1713_v25  ;;  %v772_v34 = vsel %vm546_vm2, %v767_v31, 0 }
 0x2a0   : > { %1433 = vmatprep.mubr.msk.bf16.mxu0 %vm1580_vm1, %v1579_v8 }
 0x2a2   : > { %v765_v33 = vpop.permute.xlu1 %764 }
 0x2a3   : > { %1440 = vmatmul.mubr.msk.bf16.vlgmr.msra.gmra.mrb[0].mxu1 %vm546_vm2, %v655_v32 }
 0x2a4   : > { %1450 = vmatpush3.bf16.xpose.msra.mxu1 %v772_v34  ;;  %1451 = vmatprep.mubr.msk.bf16.mxu1 %vm1580_vm1, %v1579_v8 }
 0x2a5   : > { %1461 = vmatprep.subr.bf16.mxu1 %v1579_v8 }
 0x2a6   : > { %v877_v35 = vpop.permute.xlu1 %876 }
 0x2a7   : > { %v882_v36 = vsel %vm546_vm2, %v877_v35, 0 }
 0x2aa   : > { %v875_v37 = vpop.permute.xlu1 %874 }
 0x2ab   : > { %1452 = vmatmul.mubr.msk.bf16.vlgmr.msra.gmra.mrb[4].mxu1 %vm546_vm2, %v765_v33 }
 0x2ac   : > { %1462 = vmatpush3.bf16.xpose.msra.mxu1 %v882_v36  ;;  %1463 = vmatprep.mubr.msk.bf16.mxu1 %vm1580_vm1, %v1579_v8 }
 0x2ad   : > { %1473 = vmatprep.subr.bf16.mxu1 %v1579_v8 }
 0x2b3   : > { %1464 = vmatmul.mubr.msk.bf16.vlgmr.msra.gmra.mrb[8].mxu1 %vm546_vm2, %v875_v37 }
 0x2b4   : > { %1477 = vmatprep.mubr.msk.bf16.mxu1 %vm1580_vm1, %v1579_v8 }
 0x372   : > { %v587_v42 = vpop.f32.mrb[4].mxu0 }
 0x373   : > { %v588_v43 = vadd.f32 %v587_v42, %v542_v41  ;;  %v1429_v44 = vpop.f32.mrb[5].mxu0 }
 0x374   : > { %v590_v45 = vpop.f32.mrb[6].mxu0 }
 0x375   : > { %v1430_v46 = vpop.f32.mrb[7].mxu0  ;;  %v593_v47 = vsel %vm546_vm2, %v588_v43, -inf }
 0x376   : > { %v698_v48 = vpop.f32.mrb[0].mxu1  ;;  %594 = vmax.xlane.f32.xlu1 %v593_v47 }
 0x377   : > { %v699_v49 = vadd.f32 %v698_v48, %v542_v41  ;;  %v1441_v50 = vpop.f32.mrb[1].mxu1 }
 0x378   : > { %v701_v51 = vpop.f32.mrb[2].mxu1 }
 0x379   : > { %v1442_v52 = vpop.f32.mrb[3].mxu1  ;;  %v704_v53 = vsel %vm546_vm2, %v699_v49, -inf }
 0x37a   : > { %705 = vmax.xlane.f32.xlu0 %v704_v53 }
 0x37e   : > { %v808_v54 = vpop.f32.mrb[4].mxu1 }
 0x37f   : > { %v809_v55 = vadd.f32 %v808_v54, %v542_v41  ;;  %v1453_v56 = vpop.f32.mrb[5].mxu1 }
 0x380   : > { %v811_v57 = vpop.f32.mrb[6].mxu1  ;;  %v1535_v56 = vld [vmem:[%s1864_s5] sm:$0xff]  }
 0x381   : > { %v1454_v58 = vpop.f32.mrb[7].mxu1  ;;  %v814_v59 = vsel %vm546_vm2, %v809_v55, -inf  ;;  %1474 = vmatpush3.bf16.msra.mxu1 %v1535_v56  ;;  %v1536_v57 = vld [vmem:[%s1864_s5 + $0x8] sm:$0xff]  }
 0x382   : > { %815 = vmax.xlane.f32.xlu1 %v814_v59  ;;  %1475 = vmatprep.subr.bf16.mxu1 %v1579_v8 }
 0x385   : > { %1476 = vmatpush3.bf16.msra.mxu1 %v1536_v57 }
 0x386   : > { %v918_v60 = vpop.f32.mrb[8].mxu1  ;;  %1489 = vmatprep.subr.bf16.mxu1 %v1579_v8 }
 0x387   : > { %v919_v61 = vadd.f32 %v918_v60, %v542_v41  ;;  %v1465_v62 = vpop.f32.mrb[9].mxu1 }
 0x388   : > { %v921_v63 = vpop.f32.mrb[10].mxu1 }
 0x389   : > { %v1466_v1 = vpop.f32.mrb[11].mxu1  ;;  %v924_v2 = vsel %vm546_vm2, %v919_v61, -inf }
 0x38a   : > { %925 = vmax.xlane.f32.xlu0 %v924_v2 }
 0x403   : > { %v595_v3 = vpop.xlane.xlu1 %594 }
 0x404   : > { %v596_v4 = vsub.f32 %v588_v43, %v595_v3 }
 0x406   : > { %v597_v5 = vmul.f32 1.442695, %v596_v4 }
 0x407   : > { %v706_v6 = vpop.xlane.xlu0 %705 }
 0x408   : > { %1549 = vpow2.f32 %v597_v5  ;;  %v707_v7 = vsub.f32 %v699_v49, %v706_v6 }
 0x40a   : > { %v708_v9 = vmul.f32 1.442695, %v707_v7 }
 0x40c   : > { %1551 = vpow2.f32 %v708_v9 }
 0x40f   : > { %v816_v19 = vpop.xlane.xlu1 %815 }
 0x410   : > { %v817_v20 = vsub.f32 %v809_v55, %v816_v19 }
 0x412   : > { %v1550_v10 = vpop.eup %1549  ;;  %v818_v21 = vmul.f32 1.442695, %v817_v20 }
 0x413   : > { %v599_v11 = vsel %vm546_vm2, %v1550_v10, 0.0 }
 0x414   : > { %600 = vadd.xlane.f32.xlu1 %v599_v11  ;;  %v1361_v11 = vld [vmem:[%s1865_s6] ss:$0 sm:$0xff] }
 0x416   : > { %v1552_v12 = vpop.eup %1551 }
 0x417   : > { %v926_v13 = vpop.xlane.xlu0 %925  ;;  %v710_v14 = vsel %vm546_vm2, %v1552_v12, 0.0 }
 0x418   : > { %v927_v15 = vsub.f32 %v919_v61, %v926_v13  ;;  %711 = vadd.xlane.f32.xlu0 %v710_v14 }
 0x41a   : > { %v928_v16 = vmul.f32 1.442695, %v927_v15 }
 0x41c   : > { %1553 = vpow2.f32 %v928_v16 }
 0x41d   : > { %1555 = vpow2.f32 %v818_v21 }
 0x425   : > { %605 = vrot.lane.b32.xlu1 %v1713_v25, %s1588_s17 }
 0x426   : > { %v1554_v17 = vpop.eup %1553 }
 0x427   : > { %v930_v18 = vsel %vm546_vm2, %v1554_v17, 0.0  ;;  %v1556_v22 = vpop.eup %1555 }
 0x428   : > { %931 = vadd.xlane.f32.xlu0 %v930_v18  ;;  %v820_v23 = vsel %vm546_vm2, %v1556_v22, 0.0 }
 0x43e   : > { %716 = vrot.lane.b32.xlu0 %v1713_v25, %s1589_s18  ;;  %s435_s18 = scalar_lea.vmem %s1872_s13, %s1345_s27 }
 0x449   : > { %821 = vadd.xlane.f32.xlu1 %v820_v23 }
 0x45a   : > { %826 = vrot.lane.b32.xlu1 %v1713_v25, %s1590_s19 }
 0x45e   : > { %936 = vrot.lane.b32.xlu1 %v1713_v25, %s1591_s20 }
 0x4a1   : > { %v601_v24 = vpop.xlane.xlu1 %600 }
 0x4a2   : > { %1557 = vrcp.f32 %v601_v24  ;;  %v1537_v24 = vld [vmem:[%s1868_s9] sm:$0xff]  }
 0x4a5   : > { %v606_v26 = vpop.permute.xlu1 %605  ;;  %v712_v28 = vpop.xlane.xlu0 %711 }
 0x4a6   : > { %v612_v27 = vsel %vm610_vm4, %v606_v26, 0  ;;  %1559 = vrcp.f32 %v712_v28 }
 0x4a7   : > { %1432 = vmatpush3.bf16.msra.mxu0 %v612_v27 }
 0x4a8   : > { %1443 = vmatprep.subr.bf16.mxu0 %v1579_v8 }
 0x4ac   : > { %v1558_v29 = vpop.eup %1557 }
 0x4ad   : > { %v603_v30 = vmul.f32 %v1558_v29, %v1550_v10 }
 0x4af   : > { %v604_v31 = vpack.c.bf16 %v603_v30, %v603_v30  ;;  %v1365_v30 = vld [vmem:[%s1866_s7] ss:$0 sm:$0xff] }
 0x4b0   : > { %v1560_v25 = vpop.eup %1559 }
 0x4b1   : > { %1434 = vmatmul.mubr.msk.bf16.vlgmr.msra.gmra.mrb[8].mxu0 %vm546_vm2, %v604_v31  ;;  %v714_v33 = vmul.f32 %v1560_v25, %v1552_v12  ;;  %v1366_v25 = vld [vmem:[%s1867_s8] ss:$0 sm:$0xff] }
 0x4b2   : > { %1445 = vmatprep.mubr.msk.bf16.mxu0 %vm1580_vm1, %v1579_v8 }
 0x4b3   : > { %v715_v36 = vpack.c.bf16 %v714_v33, %v714_v33 }
 0x4b5   : > { %v932_v32 = vpop.xlane.xlu0 %931 }
 0x4b9   : > { %v717_v34 = vpop.permute.xlu0 %716 }
 0x4ba   : > { %v722_v35 = vsel %vm610_vm4, %v717_v34, 0 }
 0x4bb   : > { %1444 = vmatpush3.bf16.msra.mxu0 %v722_v35  ;;  %v1539_v35 = vld [vmem:[%s1870_s11] sm:$0xff]  }
 0x4bc   : > { %1455 = vmatprep.subr.bf16.mxu0 %v1579_v8 }
 0x4be   : > { %1446 = vmatmul.mubr.msk.bf16.vlgmr.msra.gmra.mrb[12].mxu0 %vm546_vm2, %v715_v36  ;;  %v1540_v36 = vld [vmem:[%s1870_s11 + $0x8] sm:$0xff]  }
 0x4bf   : > { %1457 = vmatprep.mubr.msk.bf16.mxu0 %vm1580_vm1, %v1579_v8 }
 0x4d6   : > { %v822_v37 = vpop.xlane.xlu1 %821 }
 0x4d7   : > { %1561 = vrcp.f32 %v822_v37  ;;  %v1541_v37 = vld [vmem:[%s1870_s11 + $0x10] sm:$0xff]  }
 0x4d8   : > { %1563 = vrcp.f32 %v932_v32 }
 0x4da   : > { %v827_v38 = vpop.permute.xlu1 %826 }
 0x4db   : > { %v832_v39 = vsel %vm610_vm4, %v827_v38, 0  ;;  %v1542_v38 = vld [vmem:[%s1870_s11 + $0x18] sm:$0xff]  }
 0x4dc   : > { %1456 = vmatpush3.bf16.msra.mxu0 %v832_v39  ;;  %v1543_v39 = vld [vmem:[%s1870_s11 + $0x20] sm:$0xff]  }
 0x4dd   : > { %1467 = vmatprep.subr.bf16.mxu0 %v1579_v8 }
 0x4de   : > { %v937_v42 = vpop.permute.xlu1 %936 }
 0x4df   : > { %v942_v45 = vsel %vm610_vm4, %v937_v42, 0  ;;  %v1546_v42 = vld [vmem:[%s1870_s11 + $0x38] sm:$0xff]  }
 0x4e1   : > { %v1562_v40 = vpop.eup %1561 }
 0x4e2   : > { %v824_v41 = vmul.f32 %v1562_v40, %v1556_v22  ;;  %v1564_v44 = vpop.eup %1563  ;;  %v1544_v40 = vld [vmem:[%s1870_s11 + $0x28] sm:$0xff]  }
 0x4e3   : > { %v934_v46 = vmul.f32 %v1564_v44, %v1554_v17 }
 0x4e4   : > { %v825_v43 = vpack.c.bf16 %v824_v41, %v824_v41  ;;  %v1545_v41 = vld [vmem:[%s1870_s11 + $0x30] sm:$0xff]  }
 0x4e5   : > { %v935_v47 = vpack.c.bf16 %v934_v46, %v934_v46 }
 0x4e6   : > { %1458 = vmatmul.mubr.msk.bf16.vlgmr.msra.gmra.mrb[16].mxu0 %vm546_vm2, %v825_v43  ;;  %v1367_v43 = vld [vmem:[%s1869_s10] ss:$0 sm:$0xff] }
 0x4e7   : > { %1468 = vmatpush3.bf16.msra.mxu0 %v942_v45  ;;  %1469 = vmatprep.mubr.msk.bf16.mxu0 %vm1580_vm1, %v1579_v8 }
 0x4e8   : > { %1481 = vmatprep.subr.bf16.mxu0 %v1579_v8 }
 0x4ee   : > { %1470 = vmatmul.mubr.msk.bf16.vlgmr.msra.gmra.mrb[20].mxu0 %vm546_vm2, %v935_v47 }
 0x4ef   : > { %1485 = vmatprep.mubr.msk.bf16.mxu0 %vm1580_vm1, %v1579_v8  ;;  %1482 = vmatpush3.bf16.msra.mxu0 %v1537_v24 }
 0x4f0   : > { %1483 = vmatprep.subr.bf16.mxu0 %v1579_v8 }
 0x584   : > { %v648_v48 = vpop.f32.mrb[8].mxu0 }
 0x585   : > { %v1435_v49 = vpop.f32.mrb[9].mxu0 }
 0x586   : > { %v651_v50 = vpop.f32.mrb[10].mxu0 }
 0x587   : > { %v1436_v51 = vpop.f32.mrb[11].mxu0 }
 0x591   : > { %v758_v52 = vpop.f32.mrb[12].mxu0 }
 0x592   : > { %985 = vrot.lane.b32.xlu0 %v758_v52, %s1592_s21  ;;  %v1447_v53 = vpop.f32.mrb[13].mxu0 }
 0x593   : > { %v761_v54 = vpop.f32.mrb[14].mxu0 }
 0x594   : > { %v1448_v55 = vpop.f32.mrb[15].mxu0 }
 0x595   : > { %v1372_v55 = vld [vmem:[%s1871_s12] ss:$0 sm:$0xff] }
 0x5b9   : > { %v868_v58 = vpop.f32.mrb[16].mxu0 }
 0x5ba   : > { %989 = vrot.lane.b32.xlu1 %v868_v58, %s1593_s29  ;;  %v1459_v59 = vpop.f32.mrb[17].mxu0 }
 0x5bb   : > { %v871_v60 = vpop.f32.mrb[18].mxu0 }
 0x5bc   : > { %v1460_v61 = vpop.f32.mrb[19].mxu0 }
 0x5c1   : > { %v978_v62 = vpop.f32.mrb[20].mxu0 }
 0x5c2   : > { %993 = vrot.lane.b32.xlu0 %v978_v62, %s1594_s30  ;;  %v1471_v63 = vpop.f32.mrb[21].mxu0 }
 0x5c3   : > { %v981_v1 = vpop.f32.mrb[22].mxu0 }
 0x5c4   : > { %v1472_v2 = vpop.f32.mrb[23].mxu0 }
 0x604   : > { %v986_v3 = vpop.permute.xlu0 %985 }
 0x605   : > { %v996_v5 = vsel %vm546_vm2, %v648_v48, %v986_v3 }
 0x62c   : > { %v990_v4 = vpop.permute.xlu1 %989 }
 0x62d   : > { %v998_v6 = vsel %vm997_vm5, %v996_v5, %v990_v4 }
 0x634   : > { %v994_v7 = vpop.permute.xlu0 %993 }
 0x635   : > { %v1000_v9 = vsel %vm999_vm6, %v998_v6, %v994_v7 }
 0x636   : > { %v1001_v10 = vpack.c.bf16 %v1000_v9, %v1000_v9 }
 0x638   : > { %1478 = vmatmul.mubr.msk.bf16.vlgmr.msra.gmra.mrb[12].mxu1 %vm440_vm0, %v1001_v10 }
 0x639   : > { %1505 = vmatprep.mubr.msk.bf16.mxu1 %vm1580_vm1, %v1579_v8  ;;  %1490 = vmatpush3.bf16.msra.mxu1 %v1539_v35 }
 0x63a   : > { %1491 = vmatprep.subr.bf16.mxu1 %v1579_v8 }
 0x63d   : > { %1492 = vmatpush3.bf16.msra.mxu1 %v1540_v36 }
 0x63e   : > { %1493 = vmatprep.subr.bf16.mxu1 %v1579_v8 }
 0x641   : > { %1494 = vmatpush3.bf16.msra.mxu1 %v1541_v37 }
 0x642   : > { %1495 = vmatprep.subr.bf16.mxu1 %v1579_v8 }
 0x645   : > { %1496 = vmatpush3.bf16.msra.mxu1 %v1542_v38 }
 0x646   : > { %1497 = vmatprep.subr.bf16.mxu1 %v1579_v8 }
 0x649   : > { %1498 = vmatpush3.bf16.msra.mxu1 %v1543_v39 }
 0x64a   : > { %1499 = vmatprep.subr.bf16.mxu1 %v1579_v8 }
 0x64d   : > { %1500 = vmatpush3.bf16.msra.mxu1 %v1544_v40 }
 0x64e   : > { %1501 = vmatprep.subr.bf16.mxu1 %v1579_v8 }
 0x651   : > { %1502 = vmatpush3.bf16.msra.mxu1 %v1545_v41 }
 0x652   : > { %1503 = vmatprep.subr.bf16.mxu1 %v1579_v8 }
 0x655   : > { %1504 = vmatpush3.bf16.msra.mxu1 %v1546_v42 }
 0x70b   : > { %v1062_v12 = vpop.f32.mrb[12].mxu1 }
 0x70c   : > { %v1063_v13 = vadd.f32 %v1361_v11, %v1062_v12  ;;  %v1479_v14 = vpop.f32.mrb[13].mxu1 }
 0x70d   : > { %v1065_v15 = vpop.f32.mrb[14].mxu1 }
 0x70e   : > { %v1792_v16 = vadd.f32 %v1063_v13, %v1681_v0  ;;  %v1480_v17 = vpop.f32.mrb[15].mxu1  ;;  %v1538_v0 = vld [vmem:[%s1868_s9 + $0x8] sm:$0xff]  }
 0x70f   : > { %1484 = vmatpush3.bf16.msra.mxu0 %v1538_v0 }
 0x710   : > { %v1071_v18 = vsel %vm440_vm0, %v1792_v16, 0.0 }
 0x711   : > { %1072 = vadd.xlane.f32.xlu1 %v1071_v18 }
 0x79e   : > { %v1073_v19 = vpop.xlane.xlu1 %1072 }
 0x79f   : > { %v1074_v20 = vmul.f32 0.03125, %v1073_v19 }
 0x7a1   : > { %v1075_v21 = vsub.f32 %v1792_v16, %v1074_v20 }
 0x7a3   : > { %v1076_v22 = vmul.f32 %v1075_v21, %v1075_v21 }
 0x7a5   : > { %v1077_v23 = vsel %vm440_vm0, %v1076_v22, 0.0 }
 0x7a6   : > { %1078 = vadd.xlane.f32.xlu0 %v1077_v23 }
 0x833   : > { %v1079_v26 = vpop.xlane.xlu0 %1078 }
 0x834   : > { %v1080_v27 = vmul.f32 0.03125, %v1079_v26 }
 0x836   : > { %v1081_v28 = vadd.f32 1e-05, %v1080_v27 }
 0x838   : > { %1565 = vrsqrt.f32 %v1081_v28 }
 0x842   : > { %v1566_v29 = vpop.eup %1565 }
 0x843   : > { %v1083_v31 = vmul.f32 %v1566_v29, %v1075_v21 }
 0x845   : > { %v1090_v32 = vmul.f32 %v1365_v30, %v1083_v31 }
 0x847   : > { %v1097_v33 = vadd.f32 %v1366_v25, %v1090_v32 }
 0x849   : > { %v1098_v34 = vpack.c.bf16 %v1097_v33, %v1097_v33 }
 0x84b   : > { %1486 = vmatmul.mubr.msk.bf16.vlgmr.msra.gmra.mrb[24].mxu0 %vm440_vm0, %v1098_v34 }
 0x91e   : > { %v1159_v44 = vpop.f32.mrb[24].mxu0 }
 0x91f   : > { %v1160_v45 = vadd.f32 %v1367_v43, %v1159_v44  ;;  %v1487_v46 = vpop.f32.mrb[25].mxu0 }
 0x920   : > { %v1162_v47 = vpop.f32.mrb[26].mxu0 }
 0x921   : > { %v1371_v48 = vmul.f32 -1.702, %v1160_v45  ;;  %v1488_v49 = vpop.f32.mrb[27].mxu0 }
 0x923   : > { %v1167_v50 = vmul.f32 1.442695, %v1371_v48 }
 0x925   : > { %1567 = vpow2.f32 %v1167_v50 }
 0x92f   : > { %v1568_v51 = vpop.eup %1567 }
 0x930   : > { %v1169_v8 = vadd.f32 1.0, %v1568_v51 }
 0x932   : > { %1569 = vrcp.f32 %v1169_v8 }
 0x93c   : > { %v1570_v52 = vpop.eup %1569 }
 0x93d   : > { %v1172_v53 = vmul.f32 %v1570_v52, %v1160_v45 }
 0x93f   : > { %v1173_v54 = vpack.c.bf16 %v1172_v53, %v1172_v53 }
 0x941   : > { %1506 = vmatmul.mubr.bf16.vlgmr.msra.gmra.mrb[16].mxu1 %v1173_v54 }
 0xa14   : > { %v1279_v56 = vpop.f32.mrb[16].mxu1 }
 0xa15   : > { %v1280_v57 = vadd.f32 %v1372_v55, %v1279_v56  ;;  %v1507_v58 = vpop.f32.mrb[17].mxu1 }
 0xa16   : > { %v1282_v59 = vpop.f32.mrb[18].mxu1 }
 0xa17   : > { %v1285_v60 = vadd.f32 %v1280_v57, %v1792_v16  ;;  %v1508_v61 = vpop.f32.mrb[19].mxu1 }
 0xa19   : > { %1286 = vst.msk [vmem:[%s435_s18] sm:$0xff] %vm440_vm0, %v1285_v60 }
 0xa1a PF: > { %s23_s25 = sadd.s32 1, %s1577_s25  }
 0xa1b   : > { %p20_p4 = scmp.ge.s32.totalorder %s23_s25, 4  }
 0xa1d   :  { %22 = sbr.rel (!%p20_p4) target bundleno = 1 (0x1), region = 102 }

</bundles_post_ra>
